<compile_context>
chip_gen: v7x
topology: tpu7x:2x2x1
jax: 0.10.0
libtpu: 0.0.40
codegen_flags: <defaults>
</compile_context>

<pallas_src>
import jax
import jax.numpy as jnp
from jax import lax
from jax.experimental import pallas as pl
from jax.experimental.pallas import tpu as pltpu


def _trans_block_kernel(x_ref, w_ref, o_ref):
    """x_ref: (Cin, 2*tr, W), w_ref: (Cout, Cin), o_ref: (Cout, tr, Wo)."""
    _, _, w_in = x_ref.shape
    _, tr, wo = o_ref.shape

    w = w_ref[...]  # (Cout, Cin), resident across the row loop

    # Constant 0/1 column-selection matrices, built once per tile on the VPU:
    #   (y @ s_even)[:, j] == y[:, 2j]   and   (y @ s_odd)[:, j] == y[:, 2j+1]
    # This does the horizontal 2x2-pool "gather" on the MXU with exact 0/1
    # weights, avoiding strided lane slicing / in-kernel reshapes.
    r_idx = lax.broadcasted_iota(jnp.int32, (w_in, wo), 0)
    c_idx = lax.broadcasted_iota(jnp.int32, (w_in, wo), 1)
    s_even = (r_idx == 2 * c_idx).astype(jnp.float32)
    s_odd = (r_idx == 2 * c_idx + 1).astype(jnp.float32)

    # Statically unrolled loop over the tr output rows of this tile.  Each
    # iteration keeps only a couple of small (Cout, W) values live (running
    # max) and ends with one lane-dense (Cout, Wo) store.
    for r in range(tr):
        x_top = x_ref[:, 2 * r, :]      # (Cin, W)  input row 2r
        x_bot = x_ref[:, 2 * r + 1, :]  # (Cin, W)  input row 2r+1
        y = jnp.maximum(
            jnp.dot(w, x_top, preferred_element_type=jnp.float32),
            jnp.dot(w, x_bot, preferred_element_type=jnp.float32),
        )                               # vertical (row-pair) pool, (Cout, W)
        y_even = jnp.dot(y, s_even, preferred_element_type=jnp.float32)
        y_odd = jnp.dot(y, s_odd, preferred_element_type=jnp.float32)
        o_ref[:, r, :] = jnp.maximum(y_even, y_odd).astype(o_ref.dtype)


def _pick_row_tile(ho, w_img, cin, cout, itemsize,
                   max_unroll=32, vmem_budget=6 * 1024 * 1024):
    """Pick the output-row tile tr.

    Constraints: tr divides Ho; tr == Ho or tr % 8 == 0 (keeps the second-minor
    block dims (tr, 2*tr) legal w.r.t. the (8,128) tiling rule); the unrolled
    row loop stays short; and the double-buffered in/out blocks stay well under
    a VMEM budget sized conservatively for v7x's 64 MiB VMEM.
    """
    wo = w_img // 2
    cands = [d for d in range(1, ho + 1)
             if ho % d == 0 and (d % 8 == 0 or d == ho)]

    def blk_bytes(tr):
        x_blk = cin * (2 * tr) * w_img * itemsize
        o_blk = cout * tr * wo * itemsize
        return 2 * (x_blk + o_blk)  # double-buffered input + output blocks

    good = [d for d in cands if d <= max_unroll and blk_bytes(d) <= vmem_budget]
    return max(good) if good else min(cands)


def trans_block(x_nchw: jax.Array, weight: jax.Array) -> jax.Array:
    """Forward pass of TransBlock: 1x1 conv (no bias) then 2x2 maxpool, stride 2.

    Args:
      x_nchw: input, shape (B, Cin, H, W), NCHW.
      weight: conv weight, PyTorch layout (Cout, Cin, 1, 1) or (Cout, Cin).

    Returns:
      output, shape (B, Cout, H//2, W//2), NCHW — matches PyTorch semantics.
    """
    B, Cin, H, W = x_nchw.shape
    Cout = weight.shape[0]
    w2d = weight.reshape(Cout, Cin)
    Ho, Wo = H // 2, W // 2
    assert Ho >= 1 and Wo >= 1, "spatial dims too small for 2x2 pooling"

    # MaxPool2d((2,2), stride=2) floor mode: drop a trailing odd row/column.
    # When H and W are already even this is a full-extent slice (a no-op).
    x = x_nchw[:, :, : 2 * Ho, : 2 * Wo]

    out_dtype = jnp.promote_types(x_nchw.dtype, weight.dtype)
    itemsize = max(jnp.dtype(x_nchw.dtype).itemsize, 4)
    tr = _pick_row_tile(Ho, 2 * Wo, Cin, Cout, itemsize)
    grid = (B, Ho // tr)

    # One input stream for x: a row-pair block covering 2*tr input rows.
    x_spec = pl.BlockSpec((None, Cin, 2 * tr, 2 * Wo), lambda b, t: (b, 0, t, 0))
    w_spec = pl.BlockSpec((Cout, Cin), lambda b, t: (0, 0))
    # Output block is written directly in NCHW with the width on lanes.
    o_spec = pl.BlockSpec((None, Cout, tr, Wo), lambda b, t: (b, 0, t, 0))

    return pl.pallas_call(
        _trans_block_kernel,
        out_shape=jax.ShapeDtypeStruct((B, Cout, Ho, Wo), out_dtype),
        grid_spec=pltpu.PrefetchScalarGridSpec(
            num_scalar_prefetch=0,
            grid=grid,
            in_specs=[x_spec, w_spec],
            out_specs=o_spec,
        ),
        compiler_params=pltpu.CompilerParams(
            dimension_semantics=("parallel", "parallel"),
            vmem_limit_bytes=32 * 1024 * 1024,
        ),
    )(x, w2d)


def _reference(x_nchw, weight):
    """Pure-JAX reference: 1x1 conv (no bias) then 2x2 maxpool stride 2."""
    B, Cin, H, W = x_nchw.shape
    w2d = weight.reshape(weight.shape[0], Cin)
    y = jnp.einsum("bchw,oc->bohw", x_nchw, w2d)
    Ho, Wo = H // 2, W // 2
    y = y[:, :, : 2 * Ho, : 2 * Wo]
    y = y.reshape(y.shape[0], y.shape[1], Ho, 2, Wo, 2)
    return jnp.max(y, axis=(3, 5))


if __name__ == "__main__":
    # Small shapes consistent with the module: B=2, Cin=4, Cout=8, H=W=16.
    key = jax.random.PRNGKey(0)
    kx, kw = jax.random.split(key)
    B, Cin, Cout, H, W = 2, 4, 8, 16, 16

    x = jax.random.normal(kx, (B, Cin, H, W), dtype=jnp.float32)
    # Deterministic conv weight (PyTorch layout: Cout, Cin, 1, 1).
    weight = jax.random.normal(kw, (Cout, Cin, 1, 1), dtype=jnp.float32) * 0.1

    out = trans_block(x, weight)
    out = jax.block_until_ready(out)

    ref = _reference(x, weight)
    assert out.shape == (B, Cout, H // 2, W // 2), out.shape
    assert jnp.allclose(out, ref, atol=1e-4, rtol=1e-4), "mismatch vs reference"

    print("KERNEL_OK")
</pallas_src>

<mosaic_0001>
module attributes {stable_mosaic.version = 11 : i64} {
  func.func @_trans_block_kernel(%arg0: i32, %arg1: i32, %arg2: memref<1x4x16x16xf32, #tpu.memory_space<vmem>>, %arg3: memref<8x4xf32, #tpu.memory_space<vmem>>, %arg4: memref<1x8x8x8xf32, #tpu.memory_space<vmem>>) attributes {dimension_semantics = [#tpu.dimension_semantics<parallel>, #tpu.dimension_semantics<parallel>], iteration_bounds = array<i64: 2, 1>, scalar_prefetch = 0 : i64, scratch_operands = 0 : i64, tpu.core_type = #tpu.core_type<tc>, window_params = [{transform_indices = @transform_0, window_bounds = array<i64: 1, 4, 16, 16>}, {pipeline_mode = #tpu.pipeline_mode<synchronous>, transform_indices = @transform_1, window_bounds = array<i64: 8, 4>}, {transform_indices = @transform_2, window_bounds = array<i64: 1, 8, 8, 8>}]} {
    %c0 = arith.constant 0 : index
    %c0_0 = arith.constant 0 : index
    %0 = vector.load %arg3[%c0, %c0_0] : memref<8x4xf32, #tpu.memory_space<vmem>>, vector<8x4xf32>
    %1 = tpu.iota {dimensions = array<i32: 0>} : vector<16x8xi32>
    %2 = tpu.iota {dimensions = array<i32: 1>} : vector<16x8xi32>
    %c2_i32 = arith.constant 2 : i32
    %3 = vector.broadcast %c2_i32 : i32 to vector<16x8xi32>
    %4 = arith.muli %3, %2 : vector<16x8xi32>
    %5 = arith.cmpi eq, %1, %4 : vector<16x8xi32>
    %6 = arith.extui %5 : vector<16x8xi1> to vector<16x8xi32>
    %7 = arith.sitofp %6 : vector<16x8xi32> to vector<16x8xf32>
    %c2_i32_1 = arith.constant 2 : i32
    %8 = vector.broadcast %c2_i32_1 : i32 to vector<16x8xi32>
    %9 = arith.muli %8, %2 : vector<16x8xi32>
    %c1_i32 = arith.constant 1 : i32
    %10 = vector.broadcast %c1_i32 : i32 to vector<16x8xi32>
    %11 = arith.addi %9, %10 : vector<16x8xi32>
    %12 = arith.cmpi eq, %1, %11 : vector<16x8xi32>
    %13 = arith.extui %12 : vector<16x8xi1> to vector<16x8xi32>
    %14 = arith.sitofp %13 : vector<16x8xi32> to vector<16x8xf32>
    %c0_2 = arith.constant 0 : index
    %c0_3 = arith.constant 0 : index
    %c0_4 = arith.constant 0 : index
    %c0_5 = arith.constant 0 : index
    %15 = vector.load %arg2[%c0_2, %c0_3, %c0_4, %c0_5] : memref<1x4x16x16xf32, #tpu.memory_space<vmem>>, vector<1x4x1x16xf32>
    %16 = vector.shape_cast %15 : vector<1x4x1x16xf32> to vector<4x16xf32>
    %c0_6 = arith.constant 0 : index
    %c0_7 = arith.constant 0 : index
    %c1 = arith.constant 1 : index
    %c0_8 = arith.constant 0 : index
    %17 = vector.load %arg2[%c0_6, %c0_7, %c1, %c0_8] : memref<1x4x16x16xf32, #tpu.memory_space<vmem>>, vector<1x4x1x16xf32>
    %18 = vector.shape_cast %17 : vector<1x4x1x16xf32> to vector<4x16xf32>
    %cst = arith.constant dense<0.000000e+00> : vector<8x16xf32>
    %19 = tpu.matmul %0, %16, %cst {dimension_numbers = #tpu.dot_dimension_numbers<[1], [0], [0], [1], [0, 0, 1, 1], [], []>} : vector<8x4xf32>, vector<4x16xf32>, vector<8x16xf32> -> vector<8x16xf32>
    %cst_9 = arith.constant dense<0.000000e+00> : vector<8x16xf32>
    %20 = tpu.matmul %0, %18, %cst_9 {dimension_numbers = #tpu.dot_dimension_numbers<[1], [0], [0], [1], [0, 0, 1, 1], [], []>} : vector<8x4xf32>, vector<4x16xf32>, vector<8x16xf32> -> vector<8x16xf32>
    %21 = arith.maximumf %19, %20 : vector<8x16xf32>
    %cst_10 = arith.constant dense<0.000000e+00> : vector<8x8xf32>
    %22 = tpu.matmul %21, %7, %cst_10 {dimension_numbers = #tpu.dot_dimension_numbers<[1], [0], [0], [1], [0, 0, 1, 1], [], []>} : vector<8x16xf32>, vector<16x8xf32>, vector<8x8xf32> -> vector<8x8xf32>
    %cst_11 = arith.constant dense<0.000000e+00> : vector<8x8xf32>
    %23 = tpu.matmul %21, %14, %cst_11 {dimension_numbers = #tpu.dot_dimension_numbers<[1], [0], [0], [1], [0, 0, 1, 1], [], []>} : vector<8x16xf32>, vector<16x8xf32>, vector<8x8xf32> -> vector<8x8xf32>
    %24 = arith.maximumf %22, %23 : vector<8x8xf32>
    %c0_12 = arith.constant 0 : index
    %c0_13 = arith.constant 0 : index
    %c0_14 = arith.constant 0 : index
    %c0_15 = arith.constant 0 : index
    %25 = vector.load %arg4[%c0_12, %c0_13, %c0_14, %c0_15] : memref<1x8x8x8xf32, #tpu.memory_space<vmem>>, vector<1x8x1x8xf32>
    %26 = vector.shape_cast %25 : vector<1x8x1x8xf32> to vector<8x8xf32>
    %27 = vector.shape_cast %24 : vector<8x8xf32> to vector<1x8x1x8xf32>
    tpu.vector_store %arg4[%c0_12, %c0_13, %c0_14, %c0_15], %27 {strides = array<i32>} : memref<1x8x8x8xf32, #tpu.memory_space<vmem>>, vector<1x8x1x8xf32>,
    %c0_16 = arith.constant 0 : index
    %c0_17 = arith.constant 0 : index
    %c2 = arith.constant 2 : index
    %c0_18 = arith.constant 0 : index
    %28 = vector.load %arg2[%c0_16, %c0_17, %c2, %c0_18] : memref<1x4x16x16xf32, #tpu.memory_space<vmem>>, vector<1x4x1x16xf32>
    %29 = vector.shape_cast %28 : vector<1x4x1x16xf32> to vector<4x16xf32>
    %c0_19 = arith.constant 0 : index
    %c0_20 = arith.constant 0 : index
    %c3 = arith.constant 3 : index
    %c0_21 = arith.constant 0 : index
    %30 = vector.load %arg2[%c0_19, %c0_20, %c3, %c0_21] : memref<1x4x16x16xf32, #tpu.memory_space<vmem>>, vector<1x4x1x16xf32>
    %31 = vector.shape_cast %30 : vector<1x4x1x16xf32> to vector<4x16xf32>
    %cst_22 = arith.constant dense<0.000000e+00> : vector<8x16xf32>
    %32 = tpu.matmul %0, %29, %cst_22 {dimension_numbers = #tpu.dot_dimension_numbers<[1], [0], [0], [1], [0, 0, 1, 1], [], []>} : vector<8x4xf32>, vector<4x16xf32>, vector<8x16xf32> -> vector<8x16xf32>
    %cst_23 = arith.constant dense<0.000000e+00> : vector<8x16xf32>
    %33 = tpu.matmul %0, %31, %cst_23 {dimension_numbers = #tpu.dot_dimension_numbers<[1], [0], [0], [1], [0, 0, 1, 1], [], []>} : vector<8x4xf32>, vector<4x16xf32>, vector<8x16xf32> -> vector<8x16xf32>
    %34 = arith.maximumf %32, %33 : vector<8x16xf32>
    %cst_24 = arith.constant dense<0.000000e+00> : vector<8x8xf32>
    %35 = tpu.matmul %34, %7, %cst_24 {dimension_numbers = #tpu.dot_dimension_numbers<[1], [0], [0], [1], [0, 0, 1, 1], [], []>} : vector<8x16xf32>, vector<16x8xf32>, vector<8x8xf32> -> vector<8x8xf32>
    %cst_25 = arith.constant dense<0.000000e+00> : vector<8x8xf32>
    %36 = tpu.matmul %34, %14, %cst_25 {dimension_numbers = #tpu.dot_dimension_numbers<[1], [0], [0], [1], [0, 0, 1, 1], [], []>} : vector<8x16xf32>, vector<16x8xf32>, vector<8x8xf32> -> vector<8x8xf32>
    %37 = arith.maximumf %35, %36 : vector<8x8xf32>
    %c0_26 = arith.constant 0 : index
    %c0_27 = arith.constant 0 : index
    %c1_28 = arith.constant 1 : index
    %c0_29 = arith.constant 0 : index
    %38 = vector.load %arg4[%c0_26, %c0_27, %c1_28, %c0_29] : memref<1x8x8x8xf32, #tpu.memory_space<vmem>>, vector<1x8x1x8xf32>
    %39 = vector.shape_cast %38 : vector<1x8x1x8xf32> to vector<8x8xf32>
    %40 = vector.shape_cast %37 : vector<8x8xf32> to vector<1x8x1x8xf32>
    tpu.vector_store %arg4[%c0_26, %c0_27, %c1_28, %c0_29], %40 {strides = array<i32>} : memref<1x8x8x8xf32, #tpu.memory_space<vmem>>, vector<1x8x1x8xf32>,
    %c0_30 = arith.constant 0 : index
    %c0_31 = arith.constant 0 : index
    %c4 = arith.constant 4 : index
    %c0_32 = arith.constant 0 : index
    %41 = vector.load %arg2[%c0_30, %c0_31, %c4, %c0_32] : memref<1x4x16x16xf32, #tpu.memory_space<vmem>>, vector<1x4x1x16xf32>
    %42 = vector.shape_cast %41 : vector<1x4x1x16xf32> to vector<4x16xf32>
    %c0_33 = arith.constant 0 : index
    %c0_34 = arith.constant 0 : index
    %c5 = arith.constant 5 : index
    %c0_35 = arith.constant 0 : index
    %43 = vector.load %arg2[%c0_33, %c0_34, %c5, %c0_35] : memref<1x4x16x16xf32, #tpu.memory_space<vmem>>, vector<1x4x1x16xf32>
    %44 = vector.shape_cast %43 : vector<1x4x1x16xf32> to vector<4x16xf32>
    %cst_36 = arith.constant dense<0.000000e+00> : vector<8x16xf32>
    %45 = tpu.matmul %0, %42, %cst_36 {dimension_numbers = #tpu.dot_dimension_numbers<[1], [0], [0], [1], [0, 0, 1, 1], [], []>} : vector<8x4xf32>, vector<4x16xf32>, vector<8x16xf32> -> vector<8x16xf32>
    %cst_37 = arith.constant dense<0.000000e+00> : vector<8x16xf32>
    %46 = tpu.matmul %0, %44, %cst_37 {dimension_numbers = #tpu.dot_dimension_numbers<[1], [0], [0], [1], [0, 0, 1, 1], [], []>} : vector<8x4xf32>, vector<4x16xf32>, vector<8x16xf32> -> vector<8x16xf32>
    %47 = arith.maximumf %45, %46 : vector<8x16xf32>
    %cst_38 = arith.constant dense<0.000000e+00> : vector<8x8xf32>
    %48 = tpu.matmul %47, %7, %cst_38 {dimension_numbers = #tpu.dot_dimension_numbers<[1], [0], [0], [1], [0, 0, 1, 1], [], []>} : vector<8x16xf32>, vector<16x8xf32>, vector<8x8xf32> -> vector<8x8xf32>
    %cst_39 = arith.constant dense<0.000000e+00> : vector<8x8xf32>
    %49 = tpu.matmul %47, %14, %cst_39 {dimension_numbers = #tpu.dot_dimension_numbers<[1], [0], [0], [1], [0, 0, 1, 1], [], []>} : vector<8x16xf32>, vector<16x8xf32>, vector<8x8xf32> -> vector<8x8xf32>
    %50 = arith.maximumf %48, %49 : vector<8x8xf32>
    %c0_40 = arith.constant 0 : index
    %c0_41 = arith.constant 0 : index
    %c2_42 = arith.constant 2 : index
    %c0_43 = arith.constant 0 : index
    %51 = vector.load %arg4[%c0_40, %c0_41, %c2_42, %c0_43] : memref<1x8x8x8xf32, #tpu.memory_space<vmem>>, vector<1x8x1x8xf32>
    %52 = vector.shape_cast %51 : vector<1x8x1x8xf32> to vector<8x8xf32>
    %53 = vector.shape_cast %50 : vector<8x8xf32> to vector<1x8x1x8xf32>
    tpu.vector_store %arg4[%c0_40, %c0_41, %c2_42, %c0_43], %53 {strides = array<i32>} : memref<1x8x8x8xf32, #tpu.memory_space<vmem>>, vector<1x8x1x8xf32>,
    %c0_44 = arith.constant 0 : index
    %c0_45 = arith.constant 0 : index
    %c6 = arith.constant 6 : index
    %c0_46 = arith.constant 0 : index
    %54 = vector.load %arg2[%c0_44, %c0_45, %c6, %c0_46] : memref<1x4x16x16xf32, #tpu.memory_space<vmem>>, vector<1x4x1x16xf32>
    %55 = vector.shape_cast %54 : vector<1x4x1x16xf32> to vector<4x16xf32>
    %c0_47 = arith.constant 0 : index
    %c0_48 = arith.constant 0 : index
    %c7 = arith.constant 7 : index
    %c0_49 = arith.constant 0 : index
    %56 = vector.load %arg2[%c0_47, %c0_48, %c7, %c0_49] : memref<1x4x16x16xf32, #tpu.memory_space<vmem>>, vector<1x4x1x16xf32>
    %57 = vector.shape_cast %56 : vector<1x4x1x16xf32> to vector<4x16xf32>
    %cst_50 = arith.constant dense<0.000000e+00> : vector<8x16xf32>
    %58 = tpu.matmul %0, %55, %cst_50 {dimension_numbers = #tpu.dot_dimension_numbers<[1], [0], [0], [1], [0, 0, 1, 1], [], []>} : vector<8x4xf32>, vector<4x16xf32>, vector<8x16xf32> -> vector<8x16xf32>
    %cst_51 = arith.constant dense<0.000000e+00> : vector<8x16xf32>
    %59 = tpu.matmul %0, %57, %cst_51 {dimension_numbers = #tpu.dot_dimension_numbers<[1], [0], [0], [1], [0, 0, 1, 1], [], []>} : vector<8x4xf32>, vector<4x16xf32>, vector<8x16xf32> -> vector<8x16xf32>
    %60 = arith.maximumf %58, %59 : vector<8x16xf32>
    %cst_52 = arith.constant dense<0.000000e+00> : vector<8x8xf32>
    %61 = tpu.matmul %60, %7, %cst_52 {dimension_numbers = #tpu.dot_dimension_numbers<[1], [0], [0], [1], [0, 0, 1, 1], [], []>} : vector<8x16xf32>, vector<16x8xf32>, vector<8x8xf32> -> vector<8x8xf32>
    %cst_53 = arith.constant dense<0.000000e+00> : vector<8x8xf32>
    %62 = tpu.matmul %60, %14, %cst_53 {dimension_numbers = #tpu.dot_dimension_numbers<[1], [0], [0], [1], [0, 0, 1, 1], [], []>} : vector<8x16xf32>, vector<16x8xf32>, vector<8x8xf32> -> vector<8x8xf32>
    %63 = arith.maximumf %61, %62 : vector<8x8xf32>
    %c0_54 = arith.constant 0 : index
    %c0_55 = arith.constant 0 : index
    %c3_56 = arith.constant 3 : index
    %c0_57 = arith.constant 0 : index
    %64 = vector.load %arg4[%c0_54, %c0_55, %c3_56, %c0_57] : memref<1x8x8x8xf32, #tpu.memory_space<vmem>>, vector<1x8x1x8xf32>
    %65 = vector.shape_cast %64 : vector<1x8x1x8xf32> to vector<8x8xf32>
    %66 = vector.shape_cast %63 : vector<8x8xf32> to vector<1x8x1x8xf32>
    tpu.vector_store %arg4[%c0_54, %c0_55, %c3_56, %c0_57], %66 {strides = array<i32>} : memref<1x8x8x8xf32, #tpu.memory_space<vmem>>, vector<1x8x1x8xf32>,
    %c0_58 = arith.constant 0 : index
    %c0_59 = arith.constant 0 : index
    %c8 = arith.constant 8 : index
    %c0_60 = arith.constant 0 : index
    %67 = vector.load %arg2[%c0_58, %c0_59, %c8, %c0_60] : memref<1x4x16x16xf32, #tpu.memory_space<vmem>>, vector<1x4x1x16xf32>
    %68 = vector.shape_cast %67 : vector<1x4x1x16xf32> to vector<4x16xf32>
    %c0_61 = arith.constant 0 : index
    %c0_62 = arith.constant 0 : index
    %c9 = arith.constant 9 : index
    %c0_63 = arith.constant 0 : index
    %69 = vector.load %arg2[%c0_61, %c0_62, %c9, %c0_63] : memref<1x4x16x16xf32, #tpu.memory_space<vmem>>, vector<1x4x1x16xf32>
    %70 = vector.shape_cast %69 : vector<1x4x1x16xf32> to vector<4x16xf32>
    %cst_64 = arith.constant dense<0.000000e+00> : vector<8x16xf32>
    %71 = tpu.matmul %0, %68, %cst_64 {dimension_numbers = #tpu.dot_dimension_numbers<[1], [0], [0], [1], [0, 0, 1, 1], [], []>} : vector<8x4xf32>, vector<4x16xf32>, vector<8x16xf32> -> vector<8x16xf32>
    %cst_65 = arith.constant dense<0.000000e+00> : vector<8x16xf32>
    %72 = tpu.matmul %0, %70, %cst_65 {dimension_numbers = #tpu.dot_dimension_numbers<[1], [0], [0], [1], [0, 0, 1, 1], [], []>} : vector<8x4xf32>, vector<4x16xf32>, vector<8x16xf32> -> vector<8x16xf32>
    %73 = arith.maximumf %71, %72 : vector<8x16xf32>
    %cst_66 = arith.constant dense<0.000000e+00> : vector<8x8xf32>
    %74 = tpu.matmul %73, %7, %cst_66 {dimension_numbers = #tpu.dot_dimension_numbers<[1], [0], [0], [1], [0, 0, 1, 1], [], []>} : vector<8x16xf32>, vector<16x8xf32>, vector<8x8xf32> -> vector<8x8xf32>
    %cst_67 = arith.constant dense<0.000000e+00> : vector<8x8xf32>
    %75 = tpu.matmul %73, %14, %cst_67 {dimension_numbers = #tpu.dot_dimension_numbers<[1], [0], [0], [1], [0, 0, 1, 1], [], []>} : vector<8x16xf32>, vector<16x8xf32>, vector<8x8xf32> -> vector<8x8xf32>
    %76 = arith.maximumf %74, %75 : vector<8x8xf32>
    %c0_68 = arith.constant 0 : index
    %c0_69 = arith.constant 0 : index
    %c4_70 = arith.constant 4 : index
    %c0_71 = arith.constant 0 : index
    %77 = vector.load %arg4[%c0_68, %c0_69, %c4_70, %c0_71] : memref<1x8x8x8xf32, #tpu.memory_space<vmem>>, vector<1x8x1x8xf32>
    %78 = vector.shape_cast %77 : vector<1x8x1x8xf32> to vector<8x8xf32>
    %79 = vector.shape_cast %76 : vector<8x8xf32> to vector<1x8x1x8xf32>
    tpu.vector_store %arg4[%c0_68, %c0_69, %c4_70, %c0_71], %79 {strides = array<i32>} : memref<1x8x8x8xf32, #tpu.memory_space<vmem>>, vector<1x8x1x8xf32>,
    %c0_72 = arith.constant 0 : index
    %c0_73 = arith.constant 0 : index
    %c10 = arith.constant 10 : index
    %c0_74 = arith.constant 0 : index
    %80 = vector.load %arg2[%c0_72, %c0_73, %c10, %c0_74] : memref<1x4x16x16xf32, #tpu.memory_space<vmem>>, vector<1x4x1x16xf32>
    %81 = vector.shape_cast %80 : vector<1x4x1x16xf32> to vector<4x16xf32>
    %c0_75 = arith.constant 0 : index
    %c0_76 = arith.constant 0 : index
    %c11 = arith.constant 11 : index
    %c0_77 = arith.constant 0 : index
    %82 = vector.load %arg2[%c0_75, %c0_76, %c11, %c0_77] : memref<1x4x16x16xf32, #tpu.memory_space<vmem>>, vector<1x4x1x16xf32>
    %83 = vector.shape_cast %82 : vector<1x4x1x16xf32> to vector<4x16xf32>
    %cst_78 = arith.constant dense<0.000000e+00> : vector<8x16xf32>
    %84 = tpu.matmul %0, %81, %cst_78 {dimension_numbers = #tpu.dot_dimension_numbers<[1], [0], [0], [1], [0, 0, 1, 1], [], []>} : vector<8x4xf32>, vector<4x16xf32>, vector<8x16xf32> -> vector<8x16xf32>
    %cst_79 = arith.constant dense<0.000000e+00> : vector<8x16xf32>
    %85 = tpu.matmul %0, %83, %cst_79 {dimension_numbers = #tpu.dot_dimension_numbers<[1], [0], [0], [1], [0, 0, 1, 1], [], []>} : vector<8x4xf32>, vector<4x16xf32>, vector<8x16xf32> -> vector<8x16xf32>
    %86 = arith.maximumf %84, %85 : vector<8x16xf32>
    %cst_80 = arith.constant dense<0.000000e+00> : vector<8x8xf32>
    %87 = tpu.matmul %86, %7, %cst_80 {dimension_numbers = #tpu.dot_dimension_numbers<[1], [0], [0], [1], [0, 0, 1, 1], [], []>} : vector<8x16xf32>, vector<16x8xf32>, vector<8x8xf32> -> vector<8x8xf32>
    %cst_81 = arith.constant dense<0.000000e+00> : vector<8x8xf32>
    %88 = tpu.matmul %86, %14, %cst_81 {dimension_numbers = #tpu.dot_dimension_numbers<[1], [0], [0], [1], [0, 0, 1, 1], [], []>} : vector<8x16xf32>, vector<16x8xf32>, vector<8x8xf32> -> vector<8x8xf32>
    %89 = arith.maximumf %87, %88 : vector<8x8xf32>
    %c0_82 = arith.constant 0 : index
    %c0_83 = arith.constant 0 : index
    %c5_84 = arith.constant 5 : index
    %c0_85 = arith.constant 0 : index
    %90 = vector.load %arg4[%c0_82, %c0_83, %c5_84, %c0_85] : memref<1x8x8x8xf32, #tpu.memory_space<vmem>>, vector<1x8x1x8xf32>
    %91 = vector.shape_cast %90 : vector<1x8x1x8xf32> to vector<8x8xf32>
    %92 = vector.shape_cast %89 : vector<8x8xf32> to vector<1x8x1x8xf32>
    tpu.vector_store %arg4[%c0_82, %c0_83, %c5_84, %c0_85], %92 {strides = array<i32>} : memref<1x8x8x8xf32, #tpu.memory_space<vmem>>, vector<1x8x1x8xf32>,
    %c0_86 = arith.constant 0 : index
    %c0_87 = arith.constant 0 : index
    %c12 = arith.constant 12 : index
    %c0_88 = arith.constant 0 : index
    %93 = vector.load %arg2[%c0_86, %c0_87, %c12, %c0_88] : memref<1x4x16x16xf32, #tpu.memory_space<vmem>>, vector<1x4x1x16xf32>
    %94 = vector.shape_cast %93 : vector<1x4x1x16xf32> to vector<4x16xf32>
    %c0_89 = arith.constant 0 : index
    %c0_90 = arith.constant 0 : index
    %c13 = arith.constant 13 : index
    %c0_91 = arith.constant 0 : index
    %95 = vector.load %arg2[%c0_89, %c0_90, %c13, %c0_91] : memref<1x4x16x16xf32, #tpu.memory_space<vmem>>, vector<1x4x1x16xf32>
    %96 = vector.shape_cast %95 : vector<1x4x1x16xf32> to vector<4x16xf32>
    %cst_92 = arith.constant dense<0.000000e+00> : vector<8x16xf32>
    %97 = tpu.matmul %0, %94, %cst_92 {dimension_numbers = #tpu.dot_dimension_numbers<[1], [0], [0], [1], [0, 0, 1, 1], [], []>} : vector<8x4xf32>, vector<4x16xf32>, vector<8x16xf32> -> vector<8x16xf32>
    %cst_93 = arith.constant dense<0.000000e+00> : vector<8x16xf32>
    %98 = tpu.matmul %0, %96, %cst_93 {dimension_numbers = #tpu.dot_dimension_numbers<[1], [0], [0], [1], [0, 0, 1, 1], [], []>} : vector<8x4xf32>, vector<4x16xf32>, vector<8x16xf32> -> vector<8x16xf32>
    %99 = arith.maximumf %97, %98 : vector<8x16xf32>
    %cst_94 = arith.constant dense<0.000000e+00> : vector<8x8xf32>
    %100 = tpu.matmul %99, %7, %cst_94 {dimension_numbers = #tpu.dot_dimension_numbers<[1], [0], [0], [1], [0, 0, 1, 1], [], []>} : vector<8x16xf32>, vector<16x8xf32>, vector<8x8xf32> -> vector<8x8xf32>
    %cst_95 = arith.constant dense<0.000000e+00> : vector<8x8xf32>
    %101 = tpu.matmul %99, %14, %cst_95 {dimension_numbers = #tpu.dot_dimension_numbers<[1], [0], [0], [1], [0, 0, 1, 1], [], []>} : vector<8x16xf32>, vector<16x8xf32>, vector<8x8xf32> -> vector<8x8xf32>
    %102 = arith.maximumf %100, %101 : vector<8x8xf32>
    %c0_96 = arith.constant 0 : index
    %c0_97 = arith.constant 0 : index
    %c6_98 = arith.constant 6 : index
    %c0_99 = arith.constant 0 : index
    %103 = vector.load %arg4[%c0_96, %c0_97, %c6_98, %c0_99] : memref<1x8x8x8xf32, #tpu.memory_space<vmem>>, vector<1x8x1x8xf32>
    %104 = vector.shape_cast %103 : vector<1x8x1x8xf32> to vector<8x8xf32>
    %105 = vector.shape_cast %102 : vector<8x8xf32> to vector<1x8x1x8xf32>
    tpu.vector_store %arg4[%c0_96, %c0_97, %c6_98, %c0_99], %105 {strides = array<i32>} : memref<1x8x8x8xf32, #tpu.memory_space<vmem>>, vector<1x8x1x8xf32>,
    %c0_100 = arith.constant 0 : index
    %c0_101 = arith.constant 0 : index
    %c14 = arith.constant 14 : index
    %c0_102 = arith.constant 0 : index
    %106 = vector.load %arg2[%c0_100, %c0_101, %c14, %c0_102] : memref<1x4x16x16xf32, #tpu.memory_space<vmem>>, vector<1x4x1x16xf32>
    %107 = vector.shape_cast %106 : vector<1x4x1x16xf32> to vector<4x16xf32>
    %c0_103 = arith.constant 0 : index
    %c0_104 = arith.constant 0 : index
    %c15 = arith.constant 15 : index
    %c0_105 = arith.constant 0 : index
    %108 = vector.load %arg2[%c0_103, %c0_104, %c15, %c0_105] : memref<1x4x16x16xf32, #tpu.memory_space<vmem>>, vector<1x4x1x16xf32>
    %109 = vector.shape_cast %108 : vector<1x4x1x16xf32> to vector<4x16xf32>
    %cst_106 = arith.constant dense<0.000000e+00> : vector<8x16xf32>
    %110 = tpu.matmul %0, %107, %cst_106 {dimension_numbers = #tpu.dot_dimension_numbers<[1], [0], [0], [1], [0, 0, 1, 1], [], []>} : vector<8x4xf32>, vector<4x16xf32>, vector<8x16xf32> -> vector<8x16xf32>
    %cst_107 = arith.constant dense<0.000000e+00> : vector<8x16xf32>
    %111 = tpu.matmul %0, %109, %cst_107 {dimension_numbers = #tpu.dot_dimension_numbers<[1], [0], [0], [1], [0, 0, 1, 1], [], []>} : vector<8x4xf32>, vector<4x16xf32>, vector<8x16xf32> -> vector<8x16xf32>
    %112 = arith.maximumf %110, %111 : vector<8x16xf32>
    %cst_108 = arith.constant dense<0.000000e+00> : vector<8x8xf32>
    %113 = tpu.matmul %112, %7, %cst_108 {dimension_numbers = #tpu.dot_dimension_numbers<[1], [0], [0], [1], [0, 0, 1, 1], [], []>} : vector<8x16xf32>, vector<16x8xf32>, vector<8x8xf32> -> vector<8x8xf32>
    %cst_109 = arith.constant dense<0.000000e+00> : vector<8x8xf32>
    %114 = tpu.matmul %112, %14, %cst_109 {dimension_numbers = #tpu.dot_dimension_numbers<[1], [0], [0], [1], [0, 0, 1, 1], [], []>} : vector<8x16xf32>, vector<16x8xf32>, vector<8x8xf32> -> vector<8x8xf32>
    %115 = arith.maximumf %113, %114 : vector<8x8xf32>
    %c0_110 = arith.constant 0 : index
    %c0_111 = arith.constant 0 : index
    %c7_112 = arith.constant 7 : index
    %c0_113 = arith.constant 0 : index
    %116 = vector.load %arg4[%c0_110, %c0_111, %c7_112, %c0_113] : memref<1x8x8x8xf32, #tpu.memory_space<vmem>>, vector<1x8x1x8xf32>
    %117 = vector.shape_cast %116 : vector<1x8x1x8xf32> to vector<8x8xf32>
    %118 = vector.shape_cast %115 : vector<8x8xf32> to vector<1x8x1x8xf32>
    tpu.vector_store %arg4[%c0_110, %c0_111, %c7_112, %c0_113], %118 {strides = array<i32>} : memref<1x8x8x8xf32, #tpu.memory_space<vmem>>, vector<1x8x1x8xf32>,
    return
  }
  func.func @transform_0(%arg0: i32, %arg1: i32) -> (i32, i32, i32, i32) {
    %c0_i32 = arith.constant 0 : i32
    %c0_i32_0 = arith.constant 0 : i32
    %c0_i32_1 = arith.constant 0 : i32
    return %arg0, %c0_i32, %arg1, %c0_i32_0 : i32, i32, i32, i32
  }
  func.func @transform_1(%arg0: i32, %arg1: i32) -> (i32, i32) {
    %c0_i32 = arith.constant 0 : i32
    %c0_i32_0 = arith.constant 0 : i32
    %c0_i32_1 = arith.constant 0 : i32
    return %c0_i32, %c0_i32_0 : i32, i32
  }
  func.func @transform_2(%arg0: i32, %arg1: i32) -> (i32, i32, i32, i32) {
    %c0_i32 = arith.constant 0 : i32
    %c0_i32_0 = arith.constant 0 : i32
    %c0_i32_1 = arith.constant 0 : i32
    return %arg0, %c0_i32, %arg1, %c0_i32_0 : i32, i32, i32, i32
  }
}

</mosaic_0001>

<bundles_post_ra>
// kernel: tpu_custom_call.1
= control target key start
LH: loop header
LB: loop body
LE: loop exit
PB: predicated region body
PF: predicated region fallthrough
CT: control target
= control target key end

     0   :  { %7 = vsyncpa [#allocation3], 0  ;;  %s4709_s0 = inlined_call_operand.hbm [shape: f32[2,4,16,16], index: 0, kind: input, shape index: {}]   ;;  %s4710_s1 = inlined_call_operand.vmem [shape: f32[8,4], index: 1, kind: input, shape index: {}]   ;;  %s4711_s2 = inlined_call_operand.hbm [shape: f32[2,8,8,8], index: 2, kind: output, shape index: {}]  }
   0x1   :  { %9 = vsyncpa [#allocation3 + $0x1], 0 }
   0x2   :  { %10 = vsyncpa [#allocation4], 0 }
   0x3   :  { %12 = vsyncpa [#allocation4 + $0x1], 0  ;;  %s4008_s9 = smov 0   ;;  %s4010_s10 = smov 0  }
   0x4   :  { %s4012_s11 = smov 0   ;;  %s4014_s12 = smov 0  }
   0x5   :  { %s4016_s13 = smov 0   ;;  %s4018_s14 = smov 0  }
   0x6 LB: > { %s3376_s15 = sadd.s32 4294967295, %s3980_s14   ;;  %s3377_s16 = sadd.s32 4294967294, %s3980_s14   ;;  %s3980_s14 = sphi %s4018_s14, %s18_s14   ;;  %s3976_s13 = sphi %s4016_s13, %s4730_s13   ;;  %s3972_s12 = sphi %s4014_s12, %s4729_s12   ;;  %s3968_s11 = sphi %s4012_s11, %s4728_s11   ;;  %s3964_s10 = sphi %s4010_s10, %s4727_s10   ;;  %s3960_s9 = sphi %s4008_s9, %s4726_s9  }
   0x7   : > { %s30_s17 = sadd.s32 1, %s3976_s13  ;;  %s39_s18 = sadd.s32 1, %s3968_s11 }
   0x8   : > { %p32_p0 = scmp.ge.s32.totalorder %s30_s17, 2  ;;  %p46_p1 = scmp.ne.s32.totalorder %s3968_s11, %s3964_s10 }
   0x9   : > { %p47_p2 = scmp.eq.s32.totalorder %s3980_s14, 0  ;;  %p52_p3 = scmp.ne.s32.totalorder %s3964_s10, %s3960_s9 }
   0xa   : > { %s4732_s17 = smov (%p32_p0, %s30_s17), 0  ;;  %p53_p5 = scmp.eq.s32.totalorder %s3376_s15, 0 }
   0xb   : > { %p4049_p4 = por %p47_p2, %p46_p1  ;;  %s34_s20 = ssub.s32 %s3976_s13, %s4732_s17 }
   0xc   : > { %p99_p6 = scmp.eq.s32.totalorder %s3376_s15, 1  ;;  %p37_p7 = scmp.eq.s32.totalorder %s34_s20, 0 }
   0xd   : > { %p4055_p8 = por %p53_p5, %p52_p3  ;;  %p105_p10 = scmp.eq.s32.totalorder %s3377_s16, 1 }
   0xe   : > { %p4059_p9 = por %p99_p6, %p46_p1  ;;  %p3809_p13 = scmp.lt.s32.totalorder %s3980_s14, 2 }
   0xf   : > { %s4064_s23 = scalar_select %p37_p7, %s3968_s11, %s39_s18  }
  0x10   : > { %s4715_s22 = scalar_select %p4059_p9, 1, 0 }
  0x11   : > { %p4066_p11 = por %p105_p10, %p52_p3  ;;  %s128_s25 = sand.u32 1, %s3968_s11  }
  0x12   : > { %s3380_s26 = sshll.u32 %s128_s25, 6  ;;  %s3475_s27 = sshll.u32 %s3976_s13, 10 }
  0x13   : > { %s4716_s24 = scalar_select %p4066_p11, 1, 0 }
  0x14   : > { %s4077_s30 = scalar_lea.hbm %s4709_s0, %s3475_s27  ;;  %s132_s3 = scalar_lea.vmem [#allocation2], %s3380_s26 }
  0x15   : > { %s141_s4 = sshll.u32 %s132_s3, 4  ;;  %p4083_p0 = pnand %p3809_p13, %p4049_p4  ;;  %s4079_s4 = int_to_ptr.vmem [resolvable:$true] %s141_s4 }
  0x16   : > { %s4088_s6 = scalar_lea.sflag [#allocation3], %s128_s25  ;;  %s3868_s7 = scalar_lea.hbm %s4077_s30, 1024 }
  0x17   : > { %p3869_p2 = scmp.ne.s32.totalorder %s4077_s30, %s3868_s7  ;;  %p3870_p3 = pneg %p4083_p0 }
  0x18   : > { %s3873_s16 = scalar_lea.hbm %s4709_s0, 2048  ;;  %p3874_p4 = scmp.lt.u32.totalorder %s4077_s30, %s4709_s0 }
  0x19   : > { %p3871_p5 = pnand %p3870_p3, %p3869_p2  ;;  %p3875_p7 = scmp.lt.u32.totalorder %s3873_s16, %s3868_s7 }
  0x1a   : > { %p3877_p13 = scmp.lt.u32.totalorder %s3868_s7, %s4077_s30 }
  0x1b   : > { %p3872_p6 = pneg %p3871_p5  ;;  %p3876_p10 = por %p3875_p7, %p3874_p4 }
  0x1d   : > { %p3878_p12 = por %p3877_p13, %p3876_p10 }
  0x1f   : > { %p3879_p1 = pnand %p3878_p12, %p3872_p6 }
  0x21   : > { %3882 = shalt.err (!%p3879_p1)
}
  0x22   : > { %s3883_s20 = scalar_lea.vmem %s4079_s4, 1024  ;;  %s3982_s25 = smov [#allocation2]  }
  0x23   : > { %p3884_p2 = scmp.ne.s32.totalorder %s4079_s4, %s3883_s20  ;;  %s3888_s26 = sshll.u32 %s3982_s25, 4  ;;  %s3889_s26 = int_to_ptr.vmem [resolvable:$false] %s3888_s26 }
  0x24   : > { %s3890_s27 = scalar_lea.vmem %s3889_s26, 2048  ;;  %p3891_p9 = scmp.lt.s32.totalorder %s4079_s4, %s3889_s26 }
  0x25   : > { %p3886_p5 = pnand %p3884_p2, %p3870_p3  ;;  %p3892_p4 = scmp.lt.s32.totalorder %s3890_s27, %s3883_s20 }
  0x27   : > { %p3887_p11 = pneg %p3886_p5  ;;  %p3893_p7 = por %p3892_p4, %p3891_p9 }
  0x29   : > { %p3894_p10 = pnand %p3893_p7, %p3887_p11 }
  0x2b   : > { %3897 = shalt.err (!%p3894_p10)
}
  0x2c   : > { %s3983_s28 = smov 128   ;;  %s3984_s29 = smov 8  }
  0x2d   : > { %3804 = dma.hbm_to_vmem [thread:$0]  (!%p4083_p0), %s4077_s30, 1024, %s4079_s4, %s4088_s6, %s3983_s28, %s3983_s28, %s3984_s29  }
  0x2e   : > { %p149_p12 = scmp.lt.s32.totalorder %s3980_s14, 3  ;;  %p4718_p1 = scmp.ge.s32.totalorder %s3980_s14, 1 }
  0x30   : > { %p150_p3 = pnand %p4718_p1, %p149_p12 }
  0x31   : > { %s4120_s3 = sand.u32 (!%p150_p3), 1, %s3964_s10  }
  0x32   : > { %153 = sbr.rel (%p150_p3) target bundleno = 2055 (0x807), region = 28  ;;  %s3384_s7 = sshll.u32 (!%p150_p3), %s4120_s3, 6 }
  0x33   : > { %s156_s8 = scalar_lea.sflag (!%p150_p3), [#allocation3], %s4120_s3  ;;  %s4126_s15 = scalar_lea.vmem (!%p150_p3), [#allocation2], %s3384_s7 }
  0x39   : > { %3951 = dma.done.wait (%p4055_p8), %s156_s8, 1024  }
  0x3a   : > { %3953 = vsyncadd (%p4055_p8), %s156_s8, 4294966272  ;;  %v3985_v0 = vmov 0.0   ;;  %vm3986_vm0 = vmmov 0   ;;  %v182_v1 = vlaneseq  ;;  %vm214_vm1 = vcmask 1041409   ;;  %v201_v6 = vld [vmem:[%s4126_s15] sm:$0x1] }
  0x3b   : > { %3557 = vmatprep.subr.mxu0 %v3985_v0  ;;  %3562 = vmatprep.subr.mxu1 %v3985_v0  ;;  %vm217_vm2 = vcmask 1042434   ;;  %vm220_vm3 = vcmask 1043459   ;;  %vm226_vm4 = vcmask 1043456   ;;  %v202_v7 = vld [vmem:[%s4126_s15 + $0x10] sm:$0x1]  ;;  %vm222_vm5 = vcmask 31744  }
  0x3c   : > { %3559 = vmatprep.mubr.msk.f32.mxu0 %vm3986_vm0, %v3985_v0  ;;  %3564 = vmatprep.mubr.msk.f32.mxu1 %vm3986_vm0, %v3985_v0  ;;  %v4138_v2 = vshrl.u32 %v182_v1, 7  ;;  %v186_v3 = vand.u32 127, %v182_v1  ;;  %v203_v8 = vld [vmem:[%s4126_s15 + $0x20] sm:$0x1]  ;;  %v204_v9 = vld [vmem:[%s4126_s15 + $0x30] sm:$0x1] }
  0x3d   : > { %v213_v10 = vrot.slane %v202_v7, 7  ;;  %v216_v11 = vrot.slane %v203_v8, 6  ;;  %v205_v12 = vld [vmem:[%s4126_s15 + $0x1] sm:$0x1]  ;;  %v219_v13 = vrot.slane %v204_v9, 5  ;;  %v3987_v29 = vmov 0.0|0.0  }
  0x3e   : > { %v184_v4 = vadd.s32 8, %v4138_v2  ;;  %v187_v5 = vmul.u32 2, %v186_v3  ;;  %v206_v14 = vld [vmem:[%s4126_s15 + $0x11] sm:$0x1]  ;;  %v207_v15 = vld [vmem:[%s4126_s15 + $0x21] sm:$0x1] }
  0x3f   : > { %v215_v16 = vsel %vm214_vm1, %v213_v10, %v201_v6  ;;  %v208_v17 = vld [vmem:[%s4126_s15 + $0x31] sm:$0x1]  ;;  %v303_v18 = vrot.slane %v206_v14, 7  ;;  %v305_v19 = vrot.slane %v207_v15, 6  ;;  %v4155_v23 = vld [vmem:[%s4710_s1] sm:$0xff]  ;;  %vm382_vm12 = vcmask 130048  }
  0x40   : > { %vm188_vm6 = vcmp.eq.s32.totalorder %v4138_v2, %v187_v5  ;;  %vm189_vm7 = vcmp.eq.s32.totalorder %v184_v4, %v187_v5  ;;  %v194_v20 = vadd.s32 1, %v187_v5  ;;  %v218_v21 = vsel %vm217_vm2, %v216_v11, %v215_v16  ;;  %v595_v32 = vld [vmem:[%s4126_s15 + $0x12] sm:$0x1]  ;;  %v599_v33 = vld [vmem:[%s4126_s15 + $0x13] sm:$0x1]  ;;  %s4254_s4 = scalar_lea.vmem [#allocation5], %s3384_s7 }
  0x41   : > { %v307_v22 = vrot.slane %v208_v17, 5  ;;  %v221_v24 = vsel %vm220_vm3, %v219_v13, %v218_v21  ;;  %v304_v25 = vsel %vm214_vm1, %v303_v18, %v205_v12  ;;  %vm4159_vm8 = vmpackc.low %vm189_vm7, %vm188_vm6  ;;  %v3988_v31 = vmov 1.0|1.0   ;;  %v596_v34 = vld [vmem:[%s4126_s15 + $0x22] sm:$0x1]  ;;  %s3476_s5 = sshll.u32 %s3972_s12, 10 }
  0x42   : > { %vm195_vm9 = vcmp.eq.s32.totalorder %v4138_v2, %v194_v20  ;;  %vm196_vm10 = vcmp.eq.s32.totalorder %v184_v4, %v194_v20  ;;  %3558 = vmatpush3.msk.msra.mxu0 %vm226_vm4, %v221_v24  ;;  %v306_v27 = vsel %vm217_vm2, %v305_v19, %v304_v25  ;;  %v606_v35 = vrot.slane %v595_v32, 7  ;;  %v600_v36 = vld [vmem:[%s4126_s15 + $0x23] sm:$0x1]  ;;  %v594_v38 = vld [vmem:[%s4126_s15 + $0x2] sm:$0x1]  ;;  %s3290_s6 = sshll.u32 %s4254_s4, 4  ;;  %s4650_s19 = scalar_lea.hbm %s4711_s2, %s3476_s5  ;;  %s4652_s6 = int_to_ptr.vmem [resolvable:$true] %s3290_s6 }
  0x43   : > { %v308_v28 = vsel %vm220_vm3, %v307_v22, %v306_v27  ;;  %3560 = vmatmul.mubr.msk.f32.vlgmr.msra.gmra.mrb[0].mxu0 %vm222_vm5, %v4155_v23  ;;  %3749 = vmatprep.subr.bf16.mxu0 %v3987_v29  ;;  %vm4170_vm11 = vmpackc.low %vm196_vm10, %vm195_vm9  ;;  %v688_v37 = vrot.slane %v599_v33, 7  ;;  %v598_v39 = vld [vmem:[%s4126_s15 + $0x3] sm:$0x1]  ;;  %v597_v40 = vld [vmem:[%s4126_s15 + $0x32] sm:$0x1]  ;;  %v608_v41 = vrot.slane %v596_v34, 6 }
  0x44   : > { %3563 = vmatpush3.msk.msra.mxu1 %vm226_vm4, %v308_v28  ;;  %3751 = vmatpush3.bf16.msk.msra.mxu0 %vm4159_vm8, %v3988_v31  ;;  %v601_v42 = vld [vmem:[%s4126_s15 + $0x33] sm:$0x1]  ;;  %v690_v43 = vrot.slane %v600_v36, 6  ;;  %v607_v44 = vsel %vm214_vm1, %v606_v35, %v594_v38  ;;  %v610_v46 = vrot.slane %v597_v40, 5  ;;  %v3989_v57 = vmov 1966171168  }
  0x45   : > { %3565 = vmatmul.mubr.msk.f32.vlgmr.msra.gmra.mrb[0].mxu1 %vm222_vm5, %v4155_v23  ;;  %3752 = vmatprep.subr.bf16.mxu1 %v3987_v29  ;;  %v689_v45 = vsel %vm214_vm1, %v688_v37, %v598_v39  ;;  %v692_v47 = vrot.slane %v601_v42, 5  ;;  %v609_v49 = vsel %vm217_vm2, %v608_v41, %v607_v44  ;;  %v530_v58 = vunpack.c.l.s4 %v3989_v57  ;;  %v978_v59 = vld [vmem:[%s4126_s15 + $0x14] sm:$0x1]  ;;  %v982_v60 = vld [vmem:[%s4126_s15 + $0x15] sm:$0x1]  ;;  %s3276_s12 = scalar_lea.sflag [#allocation4], %s4120_s3 }
  0x46   : > { %3754 = vmatpush3.bf16.msk.msra.mxu1 %vm4170_vm11, %v3988_v31  ;;  %3571 = vmatprep.mubr.msk.f32.mxu0 %vm3986_vm0, %v3985_v0  ;;  %v691_v50 = vsel %vm217_vm2, %v690_v43, %v689_v45  ;;  %v611_v55 = vsel %vm220_vm3, %v610_v46, %v609_v49  ;;  %v979_v61 = vld [vmem:[%s4126_s15 + $0x24] sm:$0x1]  ;;  %v989_v62 = vrot.slane %v978_v59, 7  ;;  %v983_v3 = vld [vmem:[%s4126_s15 + $0x25] sm:$0x1]  ;;  %v1071_v4 = vrot.slane %v982_v60, 7 }
  0x47   : > { %3578 = vmatprep.mubr.msk.f32.mxu1 %vm3986_vm0, %v3985_v0  ;;  %3581 = vmatprep.subr.mxu0 %v3985_v0  ;;  %v693_v56 = vsel %vm220_vm3, %v692_v47, %v691_v50  ;;  %v531_v63 = vunpack.c.0.s8 %v530_v58  ;;  %v977_v1 = vld [vmem:[%s4126_s15 + $0x4] sm:$0x1]  ;;  %v980_v5 = vld [vmem:[%s4126_s15 + $0x34] sm:$0x1]  ;;  %v991_v6 = vrot.slane %v979_v61, 6  ;;  %v1073_v11 = vrot.slane %v983_v3, 6 }
  0x48   : > { %3586 = vmatprep.subr.mxu1 %v3985_v0  ;;  %v981_v7 = vld [vmem:[%s4126_s15 + $0x5] sm:$0x1]  ;;  %v990_v8 = vsel %vm214_vm1, %v989_v62, %v977_v1  ;;  %v984_v10 = vld [vmem:[%s4126_s15 + $0x35] sm:$0x1]  ;;  %v993_v14 = vrot.slane %v980_v5, 5  ;;  %vm585_vm13 = vcmask 57344  }
  0x49   : > { %v4239_v9 = vsub.s32 %v531_v63, %v4138_v2  ;;  %v1072_v15 = vsel %vm214_vm1, %v1071_v4, %v981_v7  ;;  %v992_v19 = vsel %vm217_vm2, %v991_v6, %v990_v8  ;;  %v1075_v20 = vrot.slane %v984_v10, 5  ;;  %v1361_v46 = vld [vmem:[%s4126_s15 + $0x16] sm:$0x1]  ;;  %v1365_v47 = vld [vmem:[%s4126_s15 + $0x17] sm:$0x1]  ;;  %s3898_s20 = scalar_lea.vmem %s4652_s6, 1024 }
  0x4a   : > { %v1074_v24 = vsel %vm217_vm2, %v1073_v11, %v1072_v15  ;;  %v994_v27 = vsel %vm220_vm3, %v993_v14, %v992_v19  ;;  %v1372_v49 = vrot.slane %v1361_v46, 7  ;;  %v1360_v50 = vld [vmem:[%s4126_s15 + $0x6] sm:$0x1]  ;;  %v1367_v58 = vld [vmem:[%s4126_s15 + $0x37] sm:$0x1]  ;;  %p3899_p8 = scmp.ne.s32.totalorder %s4652_s6, %s3898_s20  ;;  %p4723_p9 = scmp.ne.s32.totalorder %s4715_s22, 0 }
  0x4b   : > { %v1076_v37 = vsel %vm220_vm3, %v1075_v20, %v1074_v24  ;;  %v1458_v5 = vrot.slane %v1367_v58, 5  ;;  %s3990_s25 = smov [#allocation5]  }
  0x4c   : > { %p3900_p11 = pnand %p3899_p8, %p4723_p9  ;;  %s3902_s26 = sshll.u32 %s3990_s25, 4  ;;  %s3903_s26 = int_to_ptr.vmem [resolvable:$false] %s3902_s26 }
  0x4d   : > { %s3904_s27 = scalar_lea.vmem %s3903_s26, 2048  ;;  %p3905_p6 = scmp.lt.s32.totalorder %s4652_s6, %s3903_s26 }
  0x4e   : > { %p3901_p0 = pneg %p3900_p11  ;;  %p3906_p13 = scmp.lt.s32.totalorder %s3904_s27, %s3898_s20 }
  0x50   : > { %p3907_p2 = por %p3906_p13, %p3905_p6 }
  0x52   : > { %p3908_p5 = pnand %p3907_p2, %p3901_p0 }
 0x116   : > { %v295_v48 = vpop.f32.mrb[0].mxu0 }
 0x117   : > { %v3561_v51 = vpop.f32.mrb[1].mxu0 }
 0x118   : > { %v377_v52 = vpop.f32.mrb[0].mxu1  ;;  %v1366_v51 = vld [vmem:[%s4126_s15 + $0x27] sm:$0x1] }
 0x119   : > { %v381_v53 = vmax.f32 %v295_v48, %v377_v52  ;;  %v3566_v54 = vpop.f32.mrb[1].mxu1  ;;  %v1362_v48 = vld [vmem:[%s4126_s15 + $0x26] sm:$0x1]  ;;  %v1454_v52 = vrot.slane %v1365_v47, 7  ;;  %v1456_v59 = vrot.slane %v1366_v51, 6 }
 0x11a   : > { %v1374_v54 = vrot.slane %v1362_v48, 6 }
 0x11b   : > { %3572 = vmatmul.mubr.msk.f32.vlgmr.msra.gmra.mrb[2].mxu0 %vm382_vm12, %v381_v53  ;;  %3579 = vmatmul.mubr.msk.f32.vlgmr.msra.gmra.mrb[2].mxu1 %vm382_vm12, %v381_v53  ;;  %v1363_v53 = vld [vmem:[%s4126_s15 + $0x36] sm:$0x1] }
 0x11c   : > { %3582 = vmatpush3.msk.msra.mxu0 %vm226_vm4, %v611_v55  ;;  %3587 = vmatpush3.msk.msra.mxu1 %vm226_vm4, %v693_v56  ;;  %v1364_v55 = vld [vmem:[%s4126_s15 + $0x7] sm:$0x1]  ;;  %v1373_v56 = vsel %vm214_vm1, %v1372_v49, %v1360_v50  ;;  %v1376_v62 = vrot.slane %v1363_v53, 5 }
 0x11d   : > { %3583 = vmatprep.mubr.msk.f32.mxu0 %vm3986_vm0, %v3985_v0  ;;  %3588 = vmatprep.mubr.msk.f32.mxu1 %vm3986_vm0, %v3985_v0  ;;  %v1455_v63 = vsel %vm214_vm1, %v1454_v52, %v1364_v55  ;;  %v1375_v4 = vsel %vm217_vm2, %v1374_v54, %v1373_v56 }
 0x11e   : > { %3755 = vmatprep.subr.bf16.mxu0 %v3987_v29  ;;  %3758 = vmatprep.subr.bf16.mxu1 %v3987_v29  ;;  %v1457_v10 = vsel %vm217_vm2, %v1456_v59, %v1455_v63 }
 0x11f   : > { %3584 = vmatmul.mubr.msk.f32.vlgmr.msra.gmra.mrb[4].mxu0 %vm222_vm5, %v4155_v23  ;;  %3589 = vmatmul.mubr.msk.f32.vlgmr.msra.gmra.mrb[4].mxu1 %vm222_vm5, %v4155_v23  ;;  %v1459_v19 = vsel %vm220_vm3, %v1458_v5, %v1457_v10 }
 0x120   : > { %3757 = vmatpush3.bf16.msk.msra.mxu0 %vm4159_vm8, %v3988_v31  ;;  %3760 = vmatpush3.bf16.msk.msra.mxu1 %vm4170_vm11, %v3988_v31 }
 0x121   : > { %3595 = vmatprep.mubr.msk.f32.mxu0 %vm3986_vm0, %v3985_v0  ;;  %3602 = vmatprep.mubr.msk.f32.mxu1 %vm3986_vm0, %v3985_v0 }
 0x122   : > { %3605 = vmatprep.subr.mxu0 %v3985_v0  ;;  %3610 = vmatprep.subr.mxu1 %v3985_v0 }
 0x1ee   : > { %v452_v12 = vpop.f32.mrb[2].mxu0  ;;  %v522_v13 = vpop.f32.mrb[2].mxu1 }
 0x1ef   : > { %v526_v16 = vmax.f32 %v452_v12, %v522_v13  ;;  %v3573_v17 = vpop.f32.mrb[3].mxu0  ;;  %v3580_v18 = vpop.f32.mrb[3].mxu1  ;;  %v1377_v13 = vsel %vm220_vm3, %v1376_v62, %v1375_v4 }
 0x1f1   : > { %v528_v21 = vcombine.high %v526_v16, %v526_v16  ;;  %v535_v22 = vrot.slane %v526_v16, %v4239_v9 }
 0x1f2   : > { %v680_v2 = vpop.f32.mrb[4].mxu0  ;;  %v762_v25 = vpop.f32.mrb[4].mxu1 }
 0x1f3   : > { %v542_v28 = vrot.slane %v528_v21, %v4239_v9  ;;  %v543_v32 = vcombine.high %v535_v22, %v535_v22  ;;  %v551_v33 = vrot.slane %v535_v22, %v4239_v9  ;;  %v766_v34 = vmax.f32 %v680_v2, %v762_v25  ;;  %v3585_v35 = vpop.f32.mrb[5].mxu0  ;;  %v3590_v36 = vpop.f32.mrb[5].mxu1 }
 0x1f4   : > { %v1743_v36 = vld [vmem:[%s4126_s15 + $0x8] sm:$0x1] }
 0x1f5   : > { %v544_v38 = vcombine.high %v542_v28, %v542_v28  ;;  %v558_v39 = vrot.slane %v542_v28, %v4239_v9  ;;  %v565_v40 = vrot.slane %v543_v32, %v4239_v9  ;;  %v573_v41 = vcombine.high %v551_v33, %v551_v33  ;;  %586 = vst.msk [vmem:[%s4254_s4] sm:$0x1] %vm585_vm13, %v551_v33  ;;  %v1744_v32 = vld [vmem:[%s4126_s15 + $0x18] sm:$0x1]  ;;  %v1748_v33 = vld [vmem:[%s4126_s15 + $0x19] sm:$0x1] }
 0x1f6   : > { %3596 = vmatmul.mubr.msk.f32.vlgmr.msra.gmra.mrb[6].mxu0 %vm382_vm12, %v766_v34  ;;  %3603 = vmatmul.mubr.msk.f32.vlgmr.msra.gmra.mrb[6].mxu1 %vm382_vm12, %v766_v34  ;;  %v1745_v34 = vld [vmem:[%s4126_s15 + $0x28] sm:$0x1]  ;;  %v1755_v35 = vrot.slane %v1744_v32, 7 }
 0x1f7   : > { %3606 = vmatpush3.msk.msra.mxu0 %vm226_vm4, %v994_v27  ;;  %v572_v42 = vrot.slane %v544_v38, %v4239_v9  ;;  %v574_v43 = vcombine.high %v558_v39, %v558_v39  ;;  %v575_v44 = vcombine.high %v565_v40, %v565_v40  ;;  %587 = vst.msk [vmem:[%s4254_s4 + $0x8] sm:$0x1] %vm585_vm13, %v565_v40  ;;  %588 = vst.msk [vmem:[%s4254_s4 + $0x10] sm:$0x1] %vm585_vm13, %v573_v41  ;;  %v1747_v41 = vld [vmem:[%s4126_s15 + $0x9] sm:$0x1] }
 0x1f8   : > { %590 = vst.msk [vmem:[%s4254_s4 + $0x20] sm:$0x1] %vm585_vm13, %v558_v39  ;;  %3611 = vmatpush3.msk.msra.mxu1 %vm226_vm4, %v1076_v37  ;;  %3607 = vmatprep.mubr.msk.f32.mxu0 %vm3986_vm0, %v3985_v0  ;;  %v1749_v37 = vld [vmem:[%s4126_s15 + $0x29] sm:$0x1]  ;;  %v1837_v38 = vrot.slane %v1748_v33, 7  ;;  %v1757_v40 = vrot.slane %v1745_v34, 6 }
 0x1f9   : > { %3612 = vmatprep.mubr.msk.f32.mxu1 %vm3986_vm0, %v3985_v0  ;;  %3761 = vmatprep.subr.bf16.mxu0 %v3987_v29  ;;  %v576_v45 = vcombine.high %v572_v42, %v572_v42  ;;  %589 = vst.msk [vmem:[%s4254_s4 + $0x18] sm:$0x1] %vm585_vm13, %v575_v44  ;;  %591 = vst.msk [vmem:[%s4254_s4 + $0x28] sm:$0x1] %vm585_vm13, %v572_v42  ;;  %v1746_v39 = vld [vmem:[%s4126_s15 + $0x38] sm:$0x1]  ;;  %v1756_v42 = vsel %vm214_vm1, %v1755_v35, %v1743_v36 }
 0x1fa   : > { %592 = vst.msk [vmem:[%s4254_s4 + $0x30] sm:$0x1] %vm585_vm13, %v574_v43  ;;  %3608 = vmatmul.mubr.msk.f32.vlgmr.msra.gmra.mrb[8].mxu0 %vm222_vm5, %v4155_v23  ;;  %3764 = vmatprep.subr.bf16.mxu1 %v3987_v29  ;;  %v1750_v44 = vld [vmem:[%s4126_s15 + $0x39] sm:$0x1]  ;;  %v1759_v48 = vrot.slane %v1746_v39, 5  ;;  %v1838_v49 = vsel %vm214_vm1, %v1837_v38, %v1747_v41  ;;  %v1758_v52 = vsel %vm217_vm2, %v1757_v40, %v1756_v42 }
 0x1fb   : > { %3613 = vmatmul.mubr.msk.f32.vlgmr.msra.gmra.mrb[8].mxu1 %vm222_vm5, %v4155_v23  ;;  %3763 = vmatpush3.bf16.msk.msra.mxu0 %vm4159_vm8, %v3988_v31  ;;  %593 = vst.msk [vmem:[%s4254_s4 + $0x38] sm:$0x1] %vm585_vm13, %v576_v45  ;;  %v1839_v45 = vrot.slane %v1749_v37, 6  ;;  %v1841_v53 = vrot.slane %v1750_v44, 5 }
 0x1fc   : > { %3766 = vmatpush3.bf16.msk.msra.mxu1 %vm4170_vm11, %v3988_v31  ;;  %3619 = vmatprep.mubr.msk.f32.mxu0 %vm3986_vm0, %v3985_v0 }
 0x1fd   : > { %3626 = vmatprep.mubr.msk.f32.mxu1 %vm3986_vm0, %v3985_v0  ;;  %3629 = vmatprep.subr.mxu0 %v3985_v0 }
 0x1fe   : > { %3634 = vmatprep.subr.mxu1 %v3985_v0 }
 0x2c9   : > { %v836_v57 = vpop.f32.mrb[6].mxu0  ;;  %v906_v60 = vpop.f32.mrb[6].mxu1 }
 0x2ca   : > { %v3597_v61 = vpop.f32.mrb[7].mxu0  ;;  %v910_v1 = vmax.f32 %v836_v57, %v906_v60  ;;  %v3604_v3 = vpop.f32.mrb[7].mxu1  ;;  %v1840_v57 = vsel %vm217_vm2, %v1839_v45, %v1838_v49  ;;  %v1760_v60 = vsel %vm220_vm3, %v1759_v48, %v1758_v52 }
 0x2cb   : > { %v1842_v4 = vsel %vm220_vm3, %v1841_v53, %v1840_v57 }
 0x2cc   : > { %v912_v6 = vcombine.high %v910_v1, %v910_v1  ;;  %v919_v7 = vrot.slane %v910_v1, %v4239_v9 }
 0x2cd   : > { %v1063_v8 = vpop.f32.mrb[8].mxu0 }
 0x2ce   : > { %v1145_v11 = vpop.f32.mrb[8].mxu1  ;;  %v3609_v12 = vpop.f32.mrb[9].mxu0  ;;  %v926_v14 = vrot.slane %v912_v6, %v4239_v9  ;;  %v927_v15 = vcombine.high %v919_v7, %v919_v7  ;;  %v935_v16 = vrot.slane %v919_v7, %v4239_v9 }
 0x2cf   : > { %v1149_v17 = vmax.f32 %v1063_v8, %v1145_v11  ;;  %v3614_v18 = vpop.f32.mrb[9].mxu1 }
 0x2d0   : > { %v928_v20 = vcombine.high %v926_v14, %v926_v14  ;;  %v942_v21 = vrot.slane %v926_v14, %v4239_v9  ;;  %v949_v22 = vrot.slane %v927_v15, %v4239_v9  ;;  %v957_v24 = vcombine.high %v935_v16, %v935_v16  ;;  %969 = vst.msk [vmem:[%s4254_s4 + $0x1] sm:$0x1] %vm585_vm13, %v935_v16  ;;  %v2127_v14 = vld [vmem:[%s4126_s15 + $0x1a] sm:$0x1]  ;;  %v2131_v15 = vld [vmem:[%s4126_s15 + $0x1b] sm:$0x1] }
 0x2d1   : > { %3620 = vmatmul.mubr.msk.f32.vlgmr.msra.gmra.mrb[10].mxu0 %vm382_vm12, %v1149_v17  ;;  %3627 = vmatmul.mubr.msk.f32.vlgmr.msra.gmra.mrb[10].mxu1 %vm382_vm12, %v1149_v17  ;;  %v2128_v16 = vld [vmem:[%s4126_s15 + $0x2a] sm:$0x1]  ;;  %v2138_v17 = vrot.slane %v2127_v14, 7 }
 0x2d2   : > { %3630 = vmatpush3.msk.msra.mxu0 %vm226_vm4, %v1377_v13  ;;  %v956_v2 = vrot.slane %v928_v20, %v4239_v9  ;;  %v958_v25 = vcombine.high %v942_v21, %v942_v21  ;;  %v959_v27 = vcombine.high %v949_v22, %v949_v22  ;;  %970 = vst.msk [vmem:[%s4254_s4 + $0x9] sm:$0x1] %vm585_vm13, %v949_v22  ;;  %971 = vst.msk [vmem:[%s4254_s4 + $0x11] sm:$0x1] %vm585_vm13, %v957_v24  ;;  %v2126_v18 = vld [vmem:[%s4126_s15 + $0xa] sm:$0x1] }
 0x2d3   : > { %973 = vst.msk [vmem:[%s4254_s4 + $0x21] sm:$0x1] %vm585_vm13, %v942_v21  ;;  %3635 = vmatpush3.msk.msra.mxu1 %vm226_vm4, %v1459_v19  ;;  %3631 = vmatprep.mubr.msk.f32.mxu0 %vm3986_vm0, %v3985_v0  ;;  %v2132_v19 = vld [vmem:[%s4126_s15 + $0x2b] sm:$0x1]  ;;  %v2220_v20 = vrot.slane %v2131_v15, 7  ;;  %v2140_v22 = vrot.slane %v2128_v16, 6 }
 0x2d4   : > { %3636 = vmatprep.mubr.msk.f32.mxu1 %vm3986_vm0, %v3985_v0  ;;  %3767 = vmatprep.subr.bf16.mxu0 %v3987_v29  ;;  %v960_v28 = vcombine.high %v956_v2, %v956_v2  ;;  %972 = vst.msk [vmem:[%s4254_s4 + $0x19] sm:$0x1] %vm585_vm13, %v959_v27  ;;  %974 = vst.msk [vmem:[%s4254_s4 + $0x29] sm:$0x1] %vm585_vm13, %v956_v2  ;;  %v2129_v21 = vld [vmem:[%s4126_s15 + $0x3a] sm:$0x1]  ;;  %v2139_v2 = vsel %vm214_vm1, %v2138_v17, %v2126_v18 }
 0x2d5   : > { %975 = vst.msk [vmem:[%s4254_s4 + $0x31] sm:$0x1] %vm585_vm13, %v958_v25  ;;  %3632 = vmatmul.mubr.msk.f32.vlgmr.msra.gmra.mrb[12].mxu0 %vm222_vm5, %v4155_v23  ;;  %3770 = vmatprep.subr.bf16.mxu1 %v3987_v29  ;;  %v2130_v24 = vld [vmem:[%s4126_s15 + $0xb] sm:$0x1]  ;;  %v2133_v27 = vld [vmem:[%s4126_s15 + $0x3b] sm:$0x1]  ;;  %v2141_v38 = vsel %vm217_vm2, %v2140_v22, %v2139_v2 }
 0x2d6   : > { %3637 = vmatmul.mubr.msk.f32.vlgmr.msra.gmra.mrb[12].mxu1 %vm222_vm5, %v4155_v23  ;;  %3769 = vmatpush3.bf16.msk.msra.mxu0 %vm4159_vm8, %v3988_v31  ;;  %976 = vst.msk [vmem:[%s4254_s4 + $0x39] sm:$0x1] %vm585_vm13, %v960_v28  ;;  %v2222_v28 = vrot.slane %v2132_v19, 6  ;;  %v2142_v34 = vrot.slane %v2129_v21, 5  ;;  %v2221_v35 = vsel %vm214_vm1, %v2220_v20, %v2130_v24  ;;  %v2224_v39 = vrot.slane %v2133_v27, 5 }
 0x2d7   : > { %3772 = vmatpush3.bf16.msk.msra.mxu1 %vm4170_vm11, %v3988_v31  ;;  %3643 = vmatprep.mubr.msk.f32.mxu0 %vm3986_vm0, %v3985_v0 }
 0x2d8   : > { %3650 = vmatprep.mubr.msk.f32.mxu1 %vm3986_vm0, %v3985_v0  ;;  %3653 = vmatprep.subr.mxu0 %v3985_v0 }
 0x2d9   : > { %3658 = vmatprep.subr.mxu1 %v3985_v0 }
 0x3a4   : > { %v1219_v43 = vpop.f32.mrb[10].mxu0  ;;  %v1289_v46 = vpop.f32.mrb[10].mxu1 }
 0x3a5   : > { %v3621_v47 = vpop.f32.mrb[11].mxu0  ;;  %v1293_v50 = vmax.f32 %v1219_v43, %v1289_v46  ;;  %v3628_v51 = vpop.f32.mrb[11].mxu1  ;;  %v2223_v43 = vsel %vm217_vm2, %v2222_v28, %v2221_v35  ;;  %v2143_v46 = vsel %vm220_vm3, %v2142_v34, %v2141_v38 }
 0x3a6   : > { %v2225_v52 = vsel %vm220_vm3, %v2224_v39, %v2223_v43 }
 0x3a7   : > { %v1295_v54 = vcombine.high %v1293_v50, %v1293_v50  ;;  %v1302_v55 = vrot.slane %v1293_v50, %v4239_v9 }
 0x3a8   : > { %v1446_v56 = vpop.f32.mrb[12].mxu0 }
 0x3a9   : > { %v1528_v58 = vpop.f32.mrb[12].mxu1  ;;  %v3633_v59 = vpop.f32.mrb[13].mxu0  ;;  %v1309_v61 = vrot.slane %v1295_v54, %v4239_v9  ;;  %v1310_v62 = vcombine.high %v1302_v55, %v1302_v55  ;;  %v1318_v63 = vrot.slane %v1302_v55, %v4239_v9 }
 0x3aa   : > { %v1532_v1 = vmax.f32 %v1446_v56, %v1528_v58  ;;  %v3638_v3 = vpop.f32.mrb[13].mxu1 }
 0x3ab   : > { %v1311_v5 = vcombine.high %v1309_v61, %v1309_v61  ;;  %v1325_v6 = vrot.slane %v1309_v61, %v4239_v9  ;;  %v1332_v7 = vrot.slane %v1310_v62, %v4239_v9  ;;  %v1340_v8 = vcombine.high %v1318_v63, %v1318_v63  ;;  %1352 = vst.msk [vmem:[%s4254_s4 + $0x2] sm:$0x1] %vm585_vm13, %v1318_v63  ;;  %v2510_v61 = vld [vmem:[%s4126_s15 + $0x1c] sm:$0x1]  ;;  %v2514_v62 = vld [vmem:[%s4126_s15 + $0x1d] sm:$0x1] }
 0x3ac   : > { %3644 = vmatmul.mubr.msk.f32.vlgmr.msra.gmra.mrb[14].mxu0 %vm382_vm12, %v1532_v1  ;;  %3651 = vmatmul.mubr.msk.f32.vlgmr.msra.gmra.mrb[14].mxu1 %vm382_vm12, %v1532_v1  ;;  %v2511_v63 = vld [vmem:[%s4126_s15 + $0x2c] sm:$0x1]  ;;  %v2521_v1 = vrot.slane %v2510_v61, 7 }
 0x3ad   : > { %3654 = vmatpush3.msk.msra.mxu0 %vm226_vm4, %v1760_v60  ;;  %v1339_v10 = vrot.slane %v1311_v5, %v4239_v9  ;;  %v1341_v11 = vcombine.high %v1325_v6, %v1325_v6  ;;  %v1342_v12 = vcombine.high %v1332_v7, %v1332_v7  ;;  %1353 = vst.msk [vmem:[%s4254_s4 + $0xa] sm:$0x1] %vm585_vm13, %v1332_v7  ;;  %1354 = vst.msk [vmem:[%s4254_s4 + $0x12] sm:$0x1] %vm585_vm13, %v1340_v8  ;;  %v2509_v3 = vld [vmem:[%s4126_s15 + $0xc] sm:$0x1] }
 0x3ae   : > { %1356 = vst.msk [vmem:[%s4254_s4 + $0x22] sm:$0x1] %vm585_vm13, %v1325_v6  ;;  %3659 = vmatpush3.msk.msra.mxu1 %vm226_vm4, %v1842_v4  ;;  %3655 = vmatprep.mubr.msk.f32.mxu0 %vm3986_vm0, %v3985_v0  ;;  %v2515_v4 = vld [vmem:[%s4126_s15 + $0x2d] sm:$0x1]  ;;  %v2603_v5 = vrot.slane %v2514_v62, 7  ;;  %v2523_v7 = vrot.slane %v2511_v63, 6 }
 0x3af   : > { %3660 = vmatprep.mubr.msk.f32.mxu1 %vm3986_vm0, %v3985_v0  ;;  %3773 = vmatprep.subr.bf16.mxu0 %v3987_v29  ;;  %v1343_v13 = vcombine.high %v1339_v10, %v1339_v10  ;;  %1355 = vst.msk [vmem:[%s4254_s4 + $0x1a] sm:$0x1] %vm585_vm13, %v1342_v12  ;;  %1357 = vst.msk [vmem:[%s4254_s4 + $0x2a] sm:$0x1] %vm585_vm13, %v1339_v10  ;;  %v2512_v6 = vld [vmem:[%s4126_s15 + $0x3c] sm:$0x1]  ;;  %v2522_v10 = vsel %vm214_vm1, %v2521_v1, %v2509_v3 }
 0x3b0   : > { %1358 = vst.msk [vmem:[%s4254_s4 + $0x32] sm:$0x1] %vm585_vm13, %v1341_v11  ;;  %3656 = vmatmul.mubr.msk.f32.vlgmr.msra.gmra.mrb[16].mxu0 %vm222_vm5, %v4155_v23  ;;  %3776 = vmatprep.subr.bf16.mxu1 %v3987_v29  ;;  %v2513_v8 = vld [vmem:[%s4126_s15 + $0xd] sm:$0x1]  ;;  %v2516_v12 = vld [vmem:[%s4126_s15 + $0x3d] sm:$0x1]  ;;  %v2524_v20 = vsel %vm217_vm2, %v2523_v7, %v2522_v10 }
 0x3b1   : > { %3661 = vmatmul.mubr.msk.f32.vlgmr.msra.gmra.mrb[16].mxu1 %vm222_vm5, %v4155_v23  ;;  %3775 = vmatpush3.bf16.msk.msra.mxu0 %vm4159_vm8, %v3988_v31  ;;  %1359 = vst.msk [vmem:[%s4254_s4 + $0x3a] sm:$0x1] %vm585_vm13, %v1343_v13  ;;  %v2605_v13 = vrot.slane %v2515_v4, 6  ;;  %v2525_v16 = vrot.slane %v2512_v6, 5  ;;  %v2604_v17 = vsel %vm214_vm1, %v2603_v5, %v2513_v8  ;;  %v2607_v21 = vrot.slane %v2516_v12, 5 }
 0x3b2   : > { %3778 = vmatpush3.bf16.msk.msra.mxu1 %vm4170_vm11, %v3988_v31  ;;  %3667 = vmatprep.mubr.msk.f32.mxu0 %vm3986_vm0, %v3985_v0 }
 0x3b3   : > { %3674 = vmatprep.mubr.msk.f32.mxu1 %vm3986_vm0, %v3985_v0  ;;  %3677 = vmatprep.subr.mxu0 %v3985_v0 }
 0x3b4   : > { %3682 = vmatprep.subr.mxu1 %v3985_v0 }
 0x47f   : > { %v1602_v25 = vpop.f32.mrb[14].mxu0  ;;  %v1672_v32 = vpop.f32.mrb[14].mxu1 }
 0x480   : > { %v3645_v33 = vpop.f32.mrb[15].mxu0  ;;  %v1676_v36 = vmax.f32 %v1602_v25, %v1672_v32  ;;  %v3652_v37 = vpop.f32.mrb[15].mxu1  ;;  %v2606_v25 = vsel %vm217_vm2, %v2605_v13, %v2604_v17  ;;  %v2526_v32 = vsel %vm220_vm3, %v2525_v16, %v2524_v20 }
 0x481   : > { %v2608_v38 = vsel %vm220_vm3, %v2607_v21, %v2606_v25 }
 0x482   : > { %v1678_v40 = vcombine.high %v1676_v36, %v1676_v36  ;;  %v1685_v41 = vrot.slane %v1676_v36, %v4239_v9 }
 0x483   : > { %v1829_v42 = vpop.f32.mrb[16].mxu0 }
 0x484   : > { %v1911_v44 = vpop.f32.mrb[16].mxu1  ;;  %v3657_v45 = vpop.f32.mrb[17].mxu0  ;;  %v1692_v47 = vrot.slane %v1678_v40, %v4239_v9  ;;  %v1693_v48 = vcombine.high %v1685_v41, %v1685_v41  ;;  %v1701_v49 = vrot.slane %v1685_v41, %v4239_v9 }
 0x485   : > { %v1915_v50 = vmax.f32 %v1829_v42, %v1911_v44  ;;  %v3662_v51 = vpop.f32.mrb[17].mxu1 }
 0x486   : > { %v1694_v53 = vcombine.high %v1692_v47, %v1692_v47  ;;  %v1708_v54 = vrot.slane %v1692_v47, %v4239_v9  ;;  %v1715_v55 = vrot.slane %v1693_v48, %v4239_v9  ;;  %v1723_v56 = vcombine.high %v1701_v49, %v1701_v49  ;;  %1735 = vst.msk [vmem:[%s4254_s4 + $0x3] sm:$0x1] %vm585_vm13, %v1701_v49  ;;  %v2893_v47 = vld [vmem:[%s4126_s15 + $0x1e] sm:$0x1]  ;;  %v2897_v48 = vld [vmem:[%s4126_s15 + $0x1f] sm:$0x1] }
 0x487   : > { %3668 = vmatmul.mubr.msk.f32.vlgmr.msra.gmra.mrb[18].mxu0 %vm382_vm12, %v1915_v50  ;;  %3675 = vmatmul.mubr.msk.f32.vlgmr.msra.gmra.mrb[18].mxu1 %vm382_vm12, %v1915_v50  ;;  %v2894_v49 = vld [vmem:[%s4126_s15 + $0x2e] sm:$0x1]  ;;  %v2904_v50 = vrot.slane %v2893_v47, 7 }
 0x488   : > { %3678 = vmatpush3.msk.msra.mxu0 %vm226_vm4, %v2143_v46  ;;  %v1722_v57 = vrot.slane %v1694_v53, %v4239_v9  ;;  %v1724_v58 = vcombine.high %v1708_v54, %v1708_v54  ;;  %v1725_v59 = vcombine.high %v1715_v55, %v1715_v55  ;;  %1736 = vst.msk [vmem:[%s4254_s4 + $0xb] sm:$0x1] %vm585_vm13, %v1715_v55  ;;  %1737 = vst.msk [vmem:[%s4254_s4 + $0x13] sm:$0x1] %vm585_vm13, %v1723_v56  ;;  %v2892_v51 = vld [vmem:[%s4126_s15 + $0xe] sm:$0x1] }
 0x489   : > { %1739 = vst.msk [vmem:[%s4254_s4 + $0x23] sm:$0x1] %vm585_vm13, %v1708_v54  ;;  %3683 = vmatpush3.msk.msra.mxu1 %vm226_vm4, %v2225_v52  ;;  %3679 = vmatprep.mubr.msk.f32.mxu0 %vm3986_vm0, %v3985_v0  ;;  %v2898_v52 = vld [vmem:[%s4126_s15 + $0x2f] sm:$0x1]  ;;  %v2986_v53 = vrot.slane %v2897_v48, 7  ;;  %v2906_v55 = vrot.slane %v2894_v49, 6 }
 0x48a   : > { %3684 = vmatprep.mubr.msk.f32.mxu1 %vm3986_vm0, %v3985_v0  ;;  %3779 = vmatprep.subr.bf16.mxu0 %v3987_v29  ;;  %v1726_v60 = vcombine.high %v1722_v57, %v1722_v57  ;;  %1738 = vst.msk [vmem:[%s4254_s4 + $0x1b] sm:$0x1] %vm585_vm13, %v1725_v59  ;;  %1740 = vst.msk [vmem:[%s4254_s4 + $0x2b] sm:$0x1] %vm585_vm13, %v1722_v57  ;;  %v2895_v54 = vld [vmem:[%s4126_s15 + $0x3e] sm:$0x1]  ;;  %v2905_v57 = vsel %vm214_vm1, %v2904_v50, %v2892_v51 }
 0x48b   : > { %1741 = vst.msk [vmem:[%s4254_s4 + $0x33] sm:$0x1] %vm585_vm13, %v1724_v58  ;;  %3680 = vmatmul.mubr.msk.f32.vlgmr.msra.gmra.mrb[20].mxu0 %vm222_vm5, %v4155_v23  ;;  %3782 = vmatprep.subr.bf16.mxu1 %v3987_v29  ;;  %v2896_v56 = vld [vmem:[%s4126_s15 + $0xf] sm:$0x1]  ;;  %v2899_v59 = vld [vmem:[%s4126_s15 + $0x3f] sm:$0x1]  ;;  %v2907_v5 = vsel %vm217_vm2, %v2906_v55, %v2905_v57 }
 0x48c   : > { %3685 = vmatmul.mubr.msk.f32.vlgmr.msra.gmra.mrb[20].mxu1 %vm222_vm5, %v4155_v23  ;;  %3781 = vmatpush3.bf16.msk.msra.mxu0 %vm4159_vm8, %v3988_v31  ;;  %1742 = vst.msk [vmem:[%s4254_s4 + $0x3b] sm:$0x1] %vm585_vm13, %v1726_v60  ;;  %v2988_v60 = vrot.slane %v2898_v52, 6  ;;  %v2908_v63 = vrot.slane %v2895_v54, 5  ;;  %v2987_v1 = vsel %vm214_vm1, %v2986_v53, %v2896_v56  ;;  %v2990_v6 = vrot.slane %v2899_v59, 5 }
 0x48d   : > { %3784 = vmatpush3.bf16.msk.msra.mxu1 %vm4170_vm11, %v3988_v31  ;;  %3691 = vmatprep.mubr.msk.f32.mxu0 %vm3986_vm0, %v3985_v0 }
 0x48e   : > { %3698 = vmatprep.mubr.msk.f32.mxu1 %vm3986_vm0, %v3985_v0  ;;  %3701 = vmatprep.subr.mxu0 %v3985_v0 }
 0x48f   : > { %3706 = vmatprep.subr.mxu1 %v3985_v0 }
 0x55a   : > { %v1985_v11 = vpop.f32.mrb[18].mxu0  ;;  %v2055_v14 = vpop.f32.mrb[18].mxu1 }
 0x55b   : > { %v3669_v15 = vpop.f32.mrb[19].mxu0  ;;  %v2059_v18 = vmax.f32 %v1985_v11, %v2055_v14  ;;  %v3676_v19 = vpop.f32.mrb[19].mxu1  ;;  %v2989_v11 = vsel %vm217_vm2, %v2988_v60, %v2987_v1  ;;  %v2909_v14 = vsel %vm220_vm3, %v2908_v63, %v2907_v5 }
 0x55c   : > { %v2991_v20 = vsel %vm220_vm3, %v2990_v6, %v2989_v11 }
 0x55d   : > { %v2061_v22 = vcombine.high %v2059_v18, %v2059_v18  ;;  %v2068_v24 = vrot.slane %v2059_v18, %v4239_v9 }
 0x55e   : > { %v2212_v2 = vpop.f32.mrb[20].mxu0 }
 0x55f   : > { %v2294_v27 = vpop.f32.mrb[20].mxu1  ;;  %v3681_v28 = vpop.f32.mrb[21].mxu0  ;;  %v2075_v33 = vrot.slane %v2061_v22, %v4239_v9  ;;  %v2076_v34 = vcombine.high %v2068_v24, %v2068_v24  ;;  %v2084_v35 = vrot.slane %v2068_v24, %v4239_v9 }
 0x560   : > { %v2298_v36 = vmax.f32 %v2212_v2, %v2294_v27  ;;  %v3686_v37 = vpop.f32.mrb[21].mxu1 }
 0x561   : > { %v2077_v39 = vcombine.high %v2075_v33, %v2075_v33  ;;  %v2091_v40 = vrot.slane %v2075_v33, %v4239_v9  ;;  %v2098_v41 = vrot.slane %v2076_v34, %v4239_v9  ;;  %v2106_v42 = vcombine.high %v2084_v35, %v2084_v35  ;;  %2118 = vst.msk [vmem:[%s4254_s4 + $0x4] sm:$0x1] %vm585_vm13, %v2084_v35 }
 0x562   : > { %3692 = vmatmul.mubr.msk.f32.vlgmr.msra.gmra.mrb[22].mxu0 %vm382_vm12, %v2298_v36  ;;  %3699 = vmatmul.mubr.msk.f32.vlgmr.msra.gmra.mrb[22].mxu1 %vm382_vm12, %v2298_v36 }
 0x563   : > { %3702 = vmatpush3.msk.msra.mxu0 %vm226_vm4, %v2526_v32  ;;  %v2105_v43 = vrot.slane %v2077_v39, %v4239_v9  ;;  %v2107_v44 = vcombine.high %v2091_v40, %v2091_v40  ;;  %v2108_v45 = vcombine.high %v2098_v41, %v2098_v41  ;;  %2119 = vst.msk [vmem:[%s4254_s4 + $0xc] sm:$0x1] %vm585_vm13, %v2098_v41  ;;  %2120 = vst.msk [vmem:[%s4254_s4 + $0x14] sm:$0x1] %vm585_vm13, %v2106_v42 }
 0x564   : > { %2122 = vst.msk [vmem:[%s4254_s4 + $0x24] sm:$0x1] %vm585_vm13, %v2091_v40  ;;  %3707 = vmatpush3.msk.msra.mxu1 %vm226_vm4, %v2608_v38  ;;  %3703 = vmatprep.mubr.msk.f32.mxu0 %vm3986_vm0, %v3985_v0 }
 0x565   : > { %3708 = vmatprep.mubr.msk.f32.mxu1 %vm3986_vm0, %v3985_v0  ;;  %3785 = vmatprep.subr.bf16.mxu0 %v3987_v29  ;;  %v2109_v46 = vcombine.high %v2105_v43, %v2105_v43  ;;  %2121 = vst.msk [vmem:[%s4254_s4 + $0x1c] sm:$0x1] %vm585_vm13, %v2108_v45  ;;  %2123 = vst.msk [vmem:[%s4254_s4 + $0x2c] sm:$0x1] %vm585_vm13, %v2105_v43 }
 0x566   : > { %2124 = vst.msk [vmem:[%s4254_s4 + $0x34] sm:$0x1] %vm585_vm13, %v2107_v44  ;;  %3704 = vmatmul.mubr.msk.f32.vlgmr.msra.gmra.mrb[24].mxu0 %vm222_vm5, %v4155_v23  ;;  %3788 = vmatprep.subr.bf16.mxu1 %v3987_v29 }
 0x567   : > { %3709 = vmatmul.mubr.msk.f32.vlgmr.msra.gmra.mrb[24].mxu1 %vm222_vm5, %v4155_v23  ;;  %3787 = vmatpush3.bf16.msk.msra.mxu0 %vm4159_vm8, %v3988_v31  ;;  %2125 = vst.msk [vmem:[%s4254_s4 + $0x3c] sm:$0x1] %vm585_vm13, %v2109_v46 }
 0x568   : > { %3790 = vmatpush3.bf16.msk.msra.mxu1 %vm4170_vm11, %v3988_v31  ;;  %3715 = vmatprep.mubr.msk.f32.mxu0 %vm3986_vm0, %v3985_v0 }
 0x569   : > { %3722 = vmatprep.mubr.msk.f32.mxu1 %vm3986_vm0, %v3985_v0  ;;  %3725 = vmatprep.subr.mxu0 %v3985_v0 }
 0x56a   : > { %3730 = vmatprep.subr.mxu1 %v3985_v0 }
 0x635   : > { %v2368_v58 = vpop.f32.mrb[22].mxu0  ;;  %v2438_v61 = vpop.f32.mrb[22].mxu1 }
 0x636   : > { %v3693_v62 = vpop.f32.mrb[23].mxu0  ;;  %v2442_v3 = vmax.f32 %v2368_v58, %v2438_v61  ;;  %v3700_v4 = vpop.f32.mrb[23].mxu1 }
 0x638   : > { %v2444_v7 = vcombine.high %v2442_v3, %v2442_v3  ;;  %v2451_v8 = vrot.slane %v2442_v3, %v4239_v9 }
 0x639   : > { %v2595_v10 = vpop.f32.mrb[24].mxu0 }
 0x63a   : > { %v2677_v12 = vpop.f32.mrb[24].mxu1  ;;  %v3705_v13 = vpop.f32.mrb[25].mxu0  ;;  %v2458_v15 = vrot.slane %v2444_v7, %v4239_v9  ;;  %v2459_v16 = vcombine.high %v2451_v8, %v2451_v8  ;;  %v2467_v17 = vrot.slane %v2451_v8, %v4239_v9 }
 0x63b   : > { %v2681_v18 = vmax.f32 %v2595_v10, %v2677_v12  ;;  %v3710_v19 = vpop.f32.mrb[25].mxu1 }
 0x63c   : > { %v2460_v21 = vcombine.high %v2458_v15, %v2458_v15  ;;  %v2474_v22 = vrot.slane %v2458_v15, %v4239_v9  ;;  %v2481_v24 = vrot.slane %v2459_v16, %v4239_v9  ;;  %v2489_v2 = vcombine.high %v2467_v17, %v2467_v17  ;;  %2501 = vst.msk [vmem:[%s4254_s4 + $0x5] sm:$0x1] %vm585_vm13, %v2467_v17 }
 0x63d   : > { %3716 = vmatmul.mubr.msk.f32.vlgmr.msra.gmra.mrb[26].mxu0 %vm382_vm12, %v2681_v18  ;;  %3723 = vmatmul.mubr.msk.f32.vlgmr.msra.gmra.mrb[26].mxu1 %vm382_vm12, %v2681_v18 }
 0x63e   : > { %3726 = vmatpush3.msk.msra.mxu0 %vm226_vm4, %v2909_v14  ;;  %v2488_v25 = vrot.slane %v2460_v21, %v4239_v9  ;;  %v2490_v27 = vcombine.high %v2474_v22, %v2474_v22  ;;  %v2491_v28 = vcombine.high %v2481_v24, %v2481_v24  ;;  %2502 = vst.msk [vmem:[%s4254_s4 + $0xd] sm:$0x1] %vm585_vm13, %v2481_v24  ;;  %2503 = vst.msk [vmem:[%s4254_s4 + $0x15] sm:$0x1] %vm585_vm13, %v2489_v2 }
 0x63f   : > { %2505 = vst.msk [vmem:[%s4254_s4 + $0x25] sm:$0x1] %vm585_vm13, %v2474_v22  ;;  %3731 = vmatpush3.msk.msra.mxu1 %vm226_vm4, %v2991_v20  ;;  %3727 = vmatprep.mubr.msk.f32.mxu0 %vm3986_vm0, %v3985_v0 }
 0x640   : > { %3732 = vmatprep.mubr.msk.f32.mxu1 %vm3986_vm0, %v3985_v0  ;;  %3791 = vmatprep.subr.bf16.mxu0 %v3987_v29  ;;  %v2492_v32 = vcombine.high %v2488_v25, %v2488_v25  ;;  %2504 = vst.msk [vmem:[%s4254_s4 + $0x1d] sm:$0x1] %vm585_vm13, %v2491_v28  ;;  %2506 = vst.msk [vmem:[%s4254_s4 + $0x2d] sm:$0x1] %vm585_vm13, %v2488_v25 }
 0x641   : > { %2507 = vst.msk [vmem:[%s4254_s4 + $0x35] sm:$0x1] %vm585_vm13, %v2490_v27  ;;  %3728 = vmatmul.mubr.msk.f32.vlgmr.msra.gmra.mrb[28].mxu0 %vm222_vm5, %v4155_v23  ;;  %3794 = vmatprep.subr.bf16.mxu1 %v3987_v29 }
 0x642   : > { %3733 = vmatmul.mubr.msk.f32.vlgmr.msra.gmra.mrb[28].mxu1 %vm222_vm5, %v4155_v23  ;;  %3793 = vmatpush3.bf16.msk.msra.mxu0 %vm4159_vm8, %v3988_v31  ;;  %2508 = vst.msk [vmem:[%s4254_s4 + $0x3d] sm:$0x1] %vm585_vm13, %v2492_v32 }
 0x643   : > { %3796 = vmatpush3.bf16.msk.msra.mxu1 %vm4170_vm11, %v3988_v31  ;;  %3739 = vmatprep.mubr.msk.f32.mxu0 %vm3986_vm0, %v3985_v0 }
 0x644   : > { %3746 = vmatprep.mubr.msk.f32.mxu1 %vm3986_vm0, %v3985_v0 }
 0x710   : > { %v2751_v29 = vpop.f32.mrb[26].mxu0  ;;  %v2821_v33 = vpop.f32.mrb[26].mxu1 }
 0x711   : > { %v3717_v34 = vpop.f32.mrb[27].mxu0  ;;  %v2825_v23 = vmax.f32 %v2751_v29, %v2821_v33  ;;  %v3724_v35 = vpop.f32.mrb[27].mxu1 }
 0x713   : > { %v2827_v26 = vcombine.high %v2825_v23, %v2825_v23  ;;  %v2834_v36 = vrot.slane %v2825_v23, %v4239_v9 }
 0x714   : > { %v2978_v37 = vpop.f32.mrb[28].mxu0 }
 0x715   : > { %v3060_v38 = vpop.f32.mrb[28].mxu1  ;;  %v3729_v39 = vpop.f32.mrb[29].mxu0  ;;  %v2841_v30 = vrot.slane %v2827_v26, %v4239_v9  ;;  %v2842_v31 = vcombine.high %v2834_v36, %v2834_v36  ;;  %v2850_v0 = vrot.slane %v2834_v36, %v4239_v9 }
 0x716   : > { %v3064_v40 = vmax.f32 %v2978_v37, %v3060_v38  ;;  %v3734_v41 = vpop.f32.mrb[29].mxu1 }
 0x717   : > { %v2843_v42 = vcombine.high %v2841_v30, %v2841_v30  ;;  %v2857_v43 = vrot.slane %v2841_v30, %v4239_v9  ;;  %v2864_v44 = vrot.slane %v2842_v31, %v4239_v9  ;;  %v2872_v45 = vcombine.high %v2850_v0, %v2850_v0  ;;  %2884 = vst.msk [vmem:[%s4254_s4 + $0x6] sm:$0x1] %vm585_vm13, %v2850_v0 }
 0x718   : > { %3740 = vmatmul.mubr.msk.f32.vlgmr.msra.gmra.mrb[30].mxu0 %vm382_vm12, %v3064_v40  ;;  %3747 = vmatmul.mubr.msk.f32.vlgmr.msra.gmra.mrb[30].mxu1 %vm382_vm12, %v3064_v40 }
 0x719   : > { %v2871_v46 = vrot.slane %v2843_v42, %v4239_v9  ;;  %v2873_v47 = vcombine.high %v2857_v43, %v2857_v43  ;;  %v2874_v48 = vcombine.high %v2864_v44, %v2864_v44  ;;  %2885 = vst.msk [vmem:[%s4254_s4 + $0xe] sm:$0x1] %vm585_vm13, %v2864_v44  ;;  %2886 = vst.msk [vmem:[%s4254_s4 + $0x16] sm:$0x1] %vm585_vm13, %v2872_v45 }
 0x71a   : > { %2888 = vst.msk [vmem:[%s4254_s4 + $0x26] sm:$0x1] %vm585_vm13, %v2857_v43 }
 0x71b   : > { %v2875_v49 = vcombine.high %v2871_v46, %v2871_v46  ;;  %2887 = vst.msk [vmem:[%s4254_s4 + $0x1e] sm:$0x1] %vm585_vm13, %v2874_v48  ;;  %2889 = vst.msk [vmem:[%s4254_s4 + $0x2e] sm:$0x1] %vm585_vm13, %v2871_v46 }
 0x71c   : > { %2890 = vst.msk [vmem:[%s4254_s4 + $0x36] sm:$0x1] %vm585_vm13, %v2873_v47 }
 0x71d   : > { %2891 = vst.msk [vmem:[%s4254_s4 + $0x3e] sm:$0x1] %vm585_vm13, %v2875_v49 }
 0x7eb   : > { %v3134_v50 = vpop.f32.mrb[30].mxu0  ;;  %v3204_v51 = vpop.f32.mrb[30].mxu1 }
 0x7ec   : > { %v3741_v52 = vpop.f32.mrb[31].mxu0  ;;  %v3208_v53 = vmax.f32 %v3134_v50, %v3204_v51  ;;  %v3748_v54 = vpop.f32.mrb[31].mxu1 }
 0x7ee   : > { %v3210_v55 = vcombine.high %v3208_v53, %v3208_v53  ;;  %v3217_v56 = vrot.slane %v3208_v53, %v4239_v9 }
 0x7f0   : > { %v3224_v57 = vrot.slane %v3210_v55, %v4239_v9  ;;  %v3225_v58 = vcombine.high %v3217_v56, %v3217_v56  ;;  %v3233_v59 = vrot.slane %v3217_v56, %v4239_v9 }
 0x7f2   : > { %v3226_v60 = vcombine.high %v3224_v57, %v3224_v57  ;;  %v3240_v61 = vrot.slane %v3224_v57, %v4239_v9  ;;  %v3247_v62 = vrot.slane %v3225_v58, %v4239_v9  ;;  %v3255_v63 = vcombine.high %v3233_v59, %v3233_v59  ;;  %3267 = vst.msk [vmem:[%s4254_s4 + $0x7] sm:$0x1] %vm585_vm13, %v3233_v59 }
 0x7f4   : > { %v3254_v1 = vrot.slane %v3226_v60, %v4239_v9  ;;  %v3256_v3 = vcombine.high %v3240_v61, %v3240_v61  ;;  %v3257_v4 = vcombine.high %v3247_v62, %v3247_v62  ;;  %3268 = vst.msk [vmem:[%s4254_s4 + $0xf] sm:$0x1] %vm585_vm13, %v3247_v62  ;;  %3269 = vst.msk [vmem:[%s4254_s4 + $0x17] sm:$0x1] %vm585_vm13, %v3255_v63 }
 0x7f5   : > { %3271 = vst.msk [vmem:[%s4254_s4 + $0x27] sm:$0x1] %vm585_vm13, %v3240_v61 }
 0x7f6   : > { %v3258_v9 = vcombine.high %v3254_v1, %v3254_v1  ;;  %3270 = vst.msk [vmem:[%s4254_s4 + $0x1f] sm:$0x1] %vm585_vm13, %v3257_v4  ;;  %3272 = vst.msk [vmem:[%s4254_s4 + $0x2f] sm:$0x1] %vm585_vm13, %v3254_v1 }
 0x7f7   : > { %3273 = vst.msk [vmem:[%s4254_s4 + $0x37] sm:$0x1] %vm585_vm13, %v3256_v3 }
 0x7f8   : > { %3274 = vst.msk [vmem:[%s4254_s4 + $0x3f] sm:$0x1] %vm585_vm13, %v3258_v9 }
 0x7f9   : > { %3911 = shalt.err (!%p3908_p5)
}
 0x7fa   : > { %s3912_s28 = scalar_lea.hbm %s4650_s19, 1024  ;;  %s3916_s8 = scalar_lea.hbm %s4711_s2, 2048 }
 0x7fb   : > { %p3913_p4 = scmp.ne.s32.totalorder %s4650_s19, %s3912_s28  ;;  %p3917_p12 = scmp.lt.u32.totalorder %s4650_s19, %s4711_s2 }
 0x7fc   : > { %p3918_p1 = scmp.lt.u32.totalorder %s3916_s8, %s3912_s28  ;;  %p3920_p8 = scmp.lt.u32.totalorder %s3912_s28, %s4650_s19 }
 0x7fd   : > { %p3914_p7 = pnand %p3913_p4, %p4723_p9 }
 0x7fe   : > { %p3919_p3 = por %p3918_p1, %p3917_p12 }
 0x7ff   : > { %p3915_p10 = pneg %p3914_p7 }
 0x800   : > { %p3921_p11 = por %p3920_p8, %p3919_p3 }
 0x802   : > { %p3922_p0 = pnand %p3921_p11, %p3915_p10 }
 0x804   : > { %3925 = shalt.err (!%p3922_p0)
}
 0x805   : > { %s3991_s30 = smov 128   ;;  %s3992_s4 = smov 8  }
 0x806   : > { %3799 = dma.vmem_to_hbm [thread:$0]  (%p4723_p9), %s4652_s6, 1024, %s4650_s19, %s3276_s12, %s3991_s30, %s3991_s30, %s3992_s4  }
 0x807 PF: > { %s3305_s5 = sand.u32 1, %s3960_s9   ;;  %p4724_p6 = scmp.ne.s32.totalorder %s4716_s24, 0 }
 0x808   : > { %p4725_p13 = scmp.ge.s32.totalorder %s3980_s14, 2  ;;  %s3306_s16 = scalar_lea.sflag [#allocation4], %s3305_s5 }
 0x80a   : > { %p3806_p2 = pnand %p4725_p13, %p4724_p6 }
 0x80c   : > { %3955 = dma.done.wait (!%p3806_p2), %s3306_s16, 1024  }
 0x80d   : > { %3957 = vsyncadd (!%p3806_p2), %s3306_s16, 4294966272  ;;  %s18_s14 = sadd.s32 1, %s3980_s14   ;;  %s4726_s9 = smov %s3964_s10 }
 0x80e   : > { %p15_p5 = scmp.ge.s32.totalorder %s18_s14, 4   ;;  %s4727_s10 = smov %s3968_s11 }
 0x80f   : > { %s4728_s11 = smov %s4064_s23  ;;  %s4729_s12 = smov %s3976_s13 }
 0x810   : > { %s4730_s13 = smov %s4732_s17  ;;  %17 = sbr.rel (!%p15_p5) target bundleno = 6 (0x6), region = 73 }
 0x817   :  { %3311 = vsyncpa [#allocation3], 1 }
 0x818   :  { %3313 = vsyncpa [#allocation3 + $0x1], 1 }
 0x819   :  { %3314 = vsyncpa [#allocation4], 1 }
 0x81a   :  { %3316 = vsyncpa [#allocation4 + $0x1], 1 }

</bundles_post_ra>
